<compile_context>
chip_gen: v5e
topology: v5e:2x2
jax: 0.10.0
libtpu: 0.0.40
codegen_flags: <defaults>
</compile_context>

<pallas_src>
import numpy as np
import jax
import jax.numpy as jnp
from jax import lax
from jax.experimental import pallas as pl
from jax.experimental.pallas import tpu as pltpu


def _sigmoid(z):
    return 1.0 / (1.0 + jnp.exp(-z))


def convgru_kernel(a_ref, h_ref, wga_ref, woh_ref, bias_ref, out_ref):
    """Fused ConvGRU cell step for one batch image (packed lane-dense layout).

    a_ref    : (1, H, W*Ccat)   packed cat([x, h_cur], channel)
    h_ref    : (1, H, W*Ch)     packed h_cur
    wga_ref  : (W*Ccat, 9*W*Ch) banded conv weights for the x_in side,
               laid out [ky=0 | ky=1 | ky=2], each block = [u | r | o_x]
    woh_ref  : (W*Ch, 3*W*Ch)   banded conv weights for the out-gate h-part
    bias_ref : (1, 3*W*Ch)      per-pixel tiled [bu | br | bo]
    out_ref  : (1, H, W*Ch)     packed h_new
    """
    H = a_ref.shape[1]
    WCh = h_ref.shape[2]
    M = 3 * WCh                       # stacked gate width: [u | r | o_x]

    a = a_ref[0]                      # (H, W*Ccat)
    hc = h_ref[0]                     # (H, W*Ch)

    def conv3x3(inp, w_ref, acc0, m):
        # Single MXU matmul against the banded weight; then combine the three
        # kernel-row (ky) contributions with zero-padded vertical row shifts.
        y = jnp.dot(inp, w_ref[...], preferred_element_type=jnp.float32)  # (H, 3m)
        y_top = y[:, 0 * m:1 * m]     # needs input row y-1 -> shift down
        y_mid = y[:, 1 * m:2 * m]
        y_bot = y[:, 2 * m:3 * m]     # needs input row y+1 -> shift up
        zrow = jnp.zeros((1, m), jnp.float32)
        top = jnp.concatenate([zrow, y_top[:H - 1, :]], axis=0)
        bot = jnp.concatenate([y_bot[1:, :], zrow], axis=0)
        return acc0 + y_mid + top + bot

    # Gate pre-activations for update / reset / out-gate(x part): one matmul.
    bias0 = jnp.broadcast_to(bias_ref[...], (H, M))     # hoisted; bias as acc init
    gates = conv3x3(a, wga_ref, bias0, M)               # (H, 3*W*Ch)

    u = _sigmoid(gates[:, 0 * WCh:1 * WCh])
    r = _sigmoid(gates[:, 1 * WCh:2 * WCh])
    o_x = gates[:, 2 * WCh:3 * WCh]                     # already includes bo

    # Out gate: x-part + conv over (h_cur * r).
    o_pre = conv3x3(hc * r, woh_ref, o_x, WCh)
    x_out = jnp.tanh(o_pre)

    h_new = hc * (1.0 - u) + x_out * u
    out_ref[0] = h_new.astype(out_ref.dtype)


def _banded_weight(w_hwio, W):
    """HWIO (3, 3, Ci, Co) -> per-kernel-row banded matrices (3, W*Ci, W*Co).

    Row index = xi*Ci + ci (packed input pixel/channel); column index =
    xo*Co + co (packed output pixel/channel). The band encodes the kx taps and
    the width-wise zero padding (padding=1).
    """
    kh, kw, Ci, Co = w_hwio.shape
    assert kh == 3 and kw == 3, "kernel built for 3x3 convs (padding=1)"
    w = np.asarray(w_hwio, np.float32)
    wb = np.zeros((3, W * Ci, W * Co), np.float32)
    for ky in range(3):
        for kx in range(3):
            for xo in range(W):
                xi = xo + kx - 1
                if 0 <= xi < W:
                    wb[ky, xi * Ci:(xi + 1) * Ci, xo * Co:(xo + 1) * Co] = w[ky, kx]
    return wb


def convgru_forward(x_nhwc, h_nhwc, wu, bu, wr, br, wo, bo):
    """One ConvGRU cell step.

    x_nhwc : (N, H, W, Cin)        input
    h_nhwc : (N, H, W, Ch)         current hidden state
    wu/wr/wo : (3, 3, Cin+Ch, Ch)  HWIO conv weights (input channels ordered
               [x-channels, h-channels], matching torch.cat([x, h], dim=1))
    bu/br/bo : (Ch,)               biases
    returns  : (N, H, W, Ch)       new hidden state
    """
    N, H, W, Cin = x_nhwc.shape
    Ch = h_nhwc.shape[-1]
    Ccat = Cin + Ch
    WCc, WCh = W * Ccat, W * Ch

    # ---- parameter packing (would be cached per weight set in real use) ----
    band_u = _banded_weight(wu, W)                           # (3, WCc, WCh)
    band_r = _banded_weight(wr, W)
    wo_np = np.asarray(wo, np.float32)
    wo_x = wo_np.copy()
    wo_x[:, :, Cin:, :] = 0.0                                # keep x-channel part only
    band_ox = _banded_weight(wo_x, W)                        # (3, WCc, WCh)
    band_oh = _banded_weight(wo_np[:, :, Cin:, :], W)        # (3, WCh, WCh)

    wga = np.concatenate(
        [np.concatenate([band_u[k], band_r[k], band_ox[k]], axis=-1)
         for k in range(3)], axis=-1)                        # (WCc, 9*WCh)
    woh = np.concatenate([band_oh[k] for k in range(3)], axis=-1)  # (WCh, 3*WCh)

    bias_row = np.concatenate(
        [np.tile(np.asarray(bu, np.float32), W),
         np.tile(np.asarray(br, np.float32), W),
         np.tile(np.asarray(bo, np.float32), W)])[None, :]   # (1, 3*WCh)

    wga = jnp.asarray(wga)
    woh = jnp.asarray(woh)
    bias_row = jnp.asarray(bias_row)

    # ---- lane-dense activation packing: last dim = W*C (multiple of 128) ----
    a_packed = jnp.concatenate([x_nhwc, h_nhwc], axis=-1).reshape(N, H, WCc)
    h_packed = h_nhwc.reshape(N, H, WCh)

    out_packed = pl.pallas_call(
        convgru_kernel,
        out_shape=jax.ShapeDtypeStruct((N, H, WCh), jnp.float32),
        grid=(N,),
        in_specs=[
            pl.BlockSpec((1, H, WCc), lambda n: (n, 0, 0)),
            pl.BlockSpec((1, H, WCh), lambda n: (n, 0, 0)),
            pl.BlockSpec((WCc, 9 * WCh), lambda n: (0, 0)),   # weights stay resident
            pl.BlockSpec((WCh, 3 * WCh), lambda n: (0, 0)),
            pl.BlockSpec((1, 3 * WCh), lambda n: (0, 0)),
        ],
        out_specs=pl.BlockSpec((1, H, WCh), lambda n: (n, 0, 0)),
        compiler_params=pltpu.CompilerParams(
            dimension_semantics=("parallel",)),
    )(a_packed, h_packed, wga, woh, bias_row)

    return out_packed.reshape(N, H, W, Ch)


if __name__ == "__main__":
    # Small shapes consistent with the module: batch=2, in=8, hidden=8, 16x16, 3x3.
    N, Cin, Ch, H, W = 2, 8, 8, 16, 16
    key = jax.random.PRNGKey(0)
    kx, kh, k1, k2, k3, k4, k5, k6 = jax.random.split(key, 8)

    # Torch-convention NCHW tensors, moved to NHWC for the kernel layout.
    x_nchw = jax.random.normal(kx, (N, Cin, H, W), jnp.float32)
    h_nchw = jax.random.normal(kh, (N, Ch, H, W), jnp.float32)
    x = jnp.transpose(x_nchw, (0, 2, 3, 1))
    h = jnp.transpose(h_nchw, (0, 2, 3, 1))

    Ccat = Cin + Ch
    fan_in = 3 * 3 * Ccat
    scale = (1.0 / fan_in) ** 0.5
    wu = jax.random.normal(k1, (3, 3, Ccat, Ch), jnp.float32) * scale
    wr = jax.random.normal(k2, (3, 3, Ccat, Ch), jnp.float32) * scale
    wo = jax.random.normal(k3, (3, 3, Ccat, Ch), jnp.float32) * scale
    bu = jax.random.normal(k4, (Ch,), jnp.float32) * 0.01
    br = jax.random.normal(k5, (Ch,), jnp.float32) * 0.01
    bo = jax.random.normal(k6, (Ch,), jnp.float32) * 0.01

    out = convgru_forward(x, h, wu, bu, wr, br, wo, bo)
    out = jax.block_until_ready(out)

    # Pure-JAX reference (mirrors ConvGRUCell.forward).
    def conv_ref(xin, w, b):
        y = lax.conv_general_dilated(
            xin, w, window_strides=(1, 1), padding="SAME",
            dimension_numbers=("NHWC", "HWIO", "NHWC"))
        return y + b.reshape(1, 1, 1, -1)

    x_in = jnp.concatenate([x, h], axis=-1)
    u_ref = 1.0 / (1.0 + jnp.exp(-conv_ref(x_in, wu, bu)))
    r_ref = 1.0 / (1.0 + jnp.exp(-conv_ref(x_in, wr, br)))
    o_ref = jnp.tanh(conv_ref(jnp.concatenate([x, h * r_ref], axis=-1), wo, bo))
    ref = h * (1.0 - u_ref) + o_ref * u_ref

    assert out.shape == (N, H, W, Ch)
    assert jnp.allclose(out, ref, rtol=1e-4, atol=1e-4), "mismatch vs JAX reference"
    print("KERNEL_OK")
</pallas_src>

<mosaic_0001>
module attributes {stable_mosaic.version = 11 : i64} {
  func.func @convgru_kernel(%arg0: i32, %arg1: memref<1x16x256xf32, #tpu.memory_space<vmem>>, %arg2: memref<1x16x128xf32, #tpu.memory_space<vmem>>, %arg3: memref<256x1152xf32, #tpu.memory_space<vmem>>, %arg4: memref<128x384xf32, #tpu.memory_space<vmem>>, %arg5: memref<1x384xf32, #tpu.memory_space<vmem>>, %arg6: memref<1x16x128xf32, #tpu.memory_space<vmem>>) attributes {dimension_semantics = [#tpu.dimension_semantics<parallel>], iteration_bounds = array<i64: 2>, scalar_prefetch = 0 : i64, scratch_operands = 0 : i64, tpu.core_type = #tpu.core_type<tc>, window_params = [{transform_indices = @transform_0, window_bounds = array<i64: 1, 16, 256>}, {transform_indices = @transform_1, window_bounds = array<i64: 1, 16, 128>}, {pipeline_mode = #tpu.pipeline_mode<synchronous>, transform_indices = @transform_2, window_bounds = array<i64: 256, 1152>}, {pipeline_mode = #tpu.pipeline_mode<synchronous>, transform_indices = @transform_3, window_bounds = array<i64: 128, 384>}, {pipeline_mode = #tpu.pipeline_mode<synchronous>, transform_indices = @transform_4, window_bounds = array<i64: 1, 384>}, {transform_indices = @transform_5, window_bounds = array<i64: 1, 16, 128>}]} {
    %c0 = arith.constant 0 : index
    %c0_0 = arith.constant 0 : index
    %c0_1 = arith.constant 0 : index
    %0 = vector.load %arg1[%c0, %c0_0, %c0_1] : memref<1x16x256xf32, #tpu.memory_space<vmem>>, vector<1x16x256xf32>
    %1 = vector.shape_cast %0 : vector<1x16x256xf32> to vector<16x256xf32>
    %c0_2 = arith.constant 0 : index
    %c0_3 = arith.constant 0 : index
    %c0_4 = arith.constant 0 : index
    %2 = vector.load %arg2[%c0_2, %c0_3, %c0_4] : memref<1x16x128xf32, #tpu.memory_space<vmem>>, vector<1x16x128xf32>
    %3 = vector.shape_cast %2 : vector<1x16x128xf32> to vector<16x128xf32>
    %c0_5 = arith.constant 0 : index
    %c0_6 = arith.constant 0 : index
    %4 = vector.load %arg5[%c0_5, %c0_6] : memref<1x384xf32, #tpu.memory_space<vmem>>, vector<1x384xf32>
    %5 = vector.shape_cast %4 : vector<1x384xf32> to vector<1x384xf32>
    %6 = vector.broadcast %5 : vector<1x384xf32> to vector<16x384xf32>
    %c0_7 = arith.constant 0 : index
    %c0_8 = arith.constant 0 : index
    %7 = vector.load %arg3[%c0_7, %c0_8] : memref<256x1152xf32, #tpu.memory_space<vmem>>, vector<256x1152xf32>
    %cst = arith.constant dense<0.000000e+00> : vector<16x1152xf32>
    %8 = tpu.matmul %1, %7, %cst {dimension_numbers = #tpu.dot_dimension_numbers<[1], [0], [0], [1], [0, 0, 1, 1], [], []>} : vector<16x256xf32>, vector<256x1152xf32>, vector<16x1152xf32> -> vector<16x1152xf32>
    %9 = vector.extract_strided_slice %8 {offsets = [0, 0], sizes = [16, 384], strides = [1, 1]} : vector<16x1152xf32> to vector<16x384xf32>
    %10 = vector.extract_strided_slice %8 {offsets = [0, 384], sizes = [16, 384], strides = [1, 1]} : vector<16x1152xf32> to vector<16x384xf32>
    %11 = vector.extract_strided_slice %8 {offsets = [0, 768], sizes = [16, 384], strides = [1, 1]} : vector<16x1152xf32> to vector<16x384xf32>
    %cst_9 = arith.constant 0.000000e+00 : f32
    %12 = vector.broadcast %cst_9 : f32 to vector<1x384xf32>
    %13 = vector.extract_strided_slice %9 {offsets = [0, 0], sizes = [15, 384], strides = [1, 1]} : vector<16x384xf32> to vector<15x384xf32>
    %14 = tpu.concatenate %12, %13 in 0 : vector<1x384xf32>, vector<15x384xf32> -> vector<16x384xf32>
    %15 = vector.extract_strided_slice %11 {offsets = [1, 0], sizes = [15, 384], strides = [1, 1]} : vector<16x384xf32> to vector<15x384xf32>
    %16 = tpu.concatenate %15, %12 in 0 : vector<15x384xf32>, vector<1x384xf32> -> vector<16x384xf32>
    %17 = arith.addf %6, %10 : vector<16x384xf32>
    %18 = arith.addf %17, %14 : vector<16x384xf32>
    %19 = arith.addf %18, %16 : vector<16x384xf32>
    %20 = vector.extract_strided_slice %19 {offsets = [0, 0], sizes = [16, 128], strides = [1, 1]} : vector<16x384xf32> to vector<16x128xf32>
    %cst_10 = arith.constant 0.000000e+00 : f32
    %21 = vector.broadcast %cst_10 : f32 to vector<16x128xf32>
    %22 = arith.subf %21, %20 : vector<16x128xf32>
    %23 = math.exp %22 : vector<16x128xf32>
    %cst_11 = arith.constant 1.000000e+00 : f32
    %24 = vector.broadcast %cst_11 : f32 to vector<16x128xf32>
    %25 = arith.addf %24, %23 : vector<16x128xf32>
    %cst_12 = arith.constant 1.000000e+00 : f32
    %26 = vector.broadcast %cst_12 : f32 to vector<16x128xf32>
    %27 = arith.divf %26, %25 : vector<16x128xf32>
    %28 = vector.extract_strided_slice %19 {offsets = [0, 128], sizes = [16, 128], strides = [1, 1]} : vector<16x384xf32> to vector<16x128xf32>
    %cst_13 = arith.constant 0.000000e+00 : f32
    %29 = vector.broadcast %cst_13 : f32 to vector<16x128xf32>
    %30 = arith.subf %29, %28 : vector<16x128xf32>
    %31 = math.exp %30 : vector<16x128xf32>
    %cst_14 = arith.constant 1.000000e+00 : f32
    %32 = vector.broadcast %cst_14 : f32 to vector<16x128xf32>
    %33 = arith.addf %32, %31 : vector<16x128xf32>
    %cst_15 = arith.constant 1.000000e+00 : f32
    %34 = vector.broadcast %cst_15 : f32 to vector<16x128xf32>
    %35 = arith.divf %34, %33 : vector<16x128xf32>
    %36 = vector.extract_strided_slice %19 {offsets = [0, 256], sizes = [16, 128], strides = [1, 1]} : vector<16x384xf32> to vector<16x128xf32>
    %37 = arith.mulf %3, %35 : vector<16x128xf32>
    %c0_16 = arith.constant 0 : index
    %c0_17 = arith.constant 0 : index
    %38 = vector.load %arg4[%c0_16, %c0_17] : memref<128x384xf32, #tpu.memory_space<vmem>>, vector<128x384xf32>
    %cst_18 = arith.constant dense<0.000000e+00> : vector<16x384xf32>
    %39 = tpu.matmul %37, %38, %cst_18 {dimension_numbers = #tpu.dot_dimension_numbers<[1], [0], [0], [1], [0, 0, 1, 1], [], []>} : vector<16x128xf32>, vector<128x384xf32>, vector<16x384xf32> -> vector<16x384xf32>
    %40 = vector.extract_strided_slice %39 {offsets = [0, 0], sizes = [16, 128], strides = [1, 1]} : vector<16x384xf32> to vector<16x128xf32>
    %41 = vector.extract_strided_slice %39 {offsets = [0, 128], sizes = [16, 128], strides = [1, 1]} : vector<16x384xf32> to vector<16x128xf32>
    %42 = vector.extract_strided_slice %39 {offsets = [0, 256], sizes = [16, 128], strides = [1, 1]} : vector<16x384xf32> to vector<16x128xf32>
    %cst_19 = arith.constant 0.000000e+00 : f32
    %43 = vector.broadcast %cst_19 : f32 to vector<1x128xf32>
    %44 = vector.extract_strided_slice %40 {offsets = [0, 0], sizes = [15, 128], strides = [1, 1]} : vector<16x128xf32> to vector<15x128xf32>
    %45 = tpu.concatenate %43, %44 in 0 : vector<1x128xf32>, vector<15x128xf32> -> vector<16x128xf32>
    %46 = vector.extract_strided_slice %42 {offsets = [1, 0], sizes = [15, 128], strides = [1, 1]} : vector<16x128xf32> to vector<15x128xf32>
    %47 = tpu.concatenate %46, %43 in 0 : vector<15x128xf32>, vector<1x128xf32> -> vector<16x128xf32>
    %48 = arith.addf %36, %41 : vector<16x128xf32>
    %49 = arith.addf %48, %45 : vector<16x128xf32>
    %50 = arith.addf %49, %47 : vector<16x128xf32>
    %51 = math.tanh %50 : vector<16x128xf32>
    %cst_20 = arith.constant 1.000000e+00 : f32
    %52 = vector.broadcast %cst_20 : f32 to vector<16x128xf32>
    %53 = arith.subf %52, %27 : vector<16x128xf32>
    %54 = arith.mulf %3, %53 : vector<16x128xf32>
    %55 = arith.mulf %51, %27 : vector<16x128xf32>
    %56 = arith.addf %54, %55 : vector<16x128xf32>
    %c0_21 = arith.constant 0 : index
    %c0_22 = arith.constant 0 : index
    %c0_23 = arith.constant 0 : index
    %57 = vector.load %arg6[%c0_21, %c0_22, %c0_23] : memref<1x16x128xf32, #tpu.memory_space<vmem>>, vector<1x16x128xf32>
    %58 = vector.shape_cast %57 : vector<1x16x128xf32> to vector<16x128xf32>
    %59 = vector.shape_cast %56 : vector<16x128xf32> to vector<1x16x128xf32>
    tpu.vector_store %arg6[%c0_21, %c0_22, %c0_23], %59 {strides = array<i32>} : memref<1x16x128xf32, #tpu.memory_space<vmem>>, vector<1x16x128xf32>,
    return
  }
  func.func @transform_0(%arg0: i32) -> (i32, i32, i32) {
    %c0_i32 = arith.constant 0 : i32
    %c0_i32_0 = arith.constant 0 : i32
    %c0_i32_1 = arith.constant 0 : i32
    return %arg0, %c0_i32, %c0_i32_0 : i32, i32, i32
  }
  func.func @transform_1(%arg0: i32) -> (i32, i32, i32) {
    %c0_i32 = arith.constant 0 : i32
    %c0_i32_0 = arith.constant 0 : i32
    %c0_i32_1 = arith.constant 0 : i32
    return %arg0, %c0_i32, %c0_i32_0 : i32, i32, i32
  }
  func.func @transform_2(%arg0: i32) -> (i32, i32) {
    %c0_i32 = arith.constant 0 : i32
    %c0_i32_0 = arith.constant 0 : i32
    %c0_i32_1 = arith.constant 0 : i32
    return %c0_i32, %c0_i32_0 : i32, i32
  }
  func.func @transform_3(%arg0: i32) -> (i32, i32) {
    %c0_i32 = arith.constant 0 : i32
    %c0_i32_0 = arith.constant 0 : i32
    %c0_i32_1 = arith.constant 0 : i32
    return %c0_i32, %c0_i32_0 : i32, i32
  }
  func.func @transform_4(%arg0: i32) -> (i32, i32) {
    %c0_i32 = arith.constant 0 : i32
    %c0_i32_0 = arith.constant 0 : i32
    %c0_i32_1 = arith.constant 0 : i32
    return %c0_i32, %c0_i32_0 : i32, i32
  }
  func.func @transform_5(%arg0: i32) -> (i32, i32, i32) {
    %c0_i32 = arith.constant 0 : i32
    %c0_i32_0 = arith.constant 0 : i32
    %c0_i32_1 = arith.constant 0 : i32
    return %arg0, %c0_i32, %c0_i32_0 : i32, i32, i32
  }
}

</mosaic_0001>

<bundles_post_ra>
// kernel: tpu_custom_call.1
= control target key start
LH: loop header
LB: loop body
LE: loop exit
PB: predicated region body
PF: predicated region fallthrough
CT: control target
= control target key end

     0   :  { %s2241_s0 = inlined_call_operand.hbm [shape: f32[2,16,256], index: 0, kind: input, shape index: {}]   ;;  %s2242_s1 = inlined_call_operand.hbm [shape: f32[2,16,128], index: 1, kind: input, shape index: {}]   ;;  %s2243_s2 = inlined_call_operand.hbm [shape: f32[256,1152], index: 2, kind: input, shape index: {}]   ;;  %s2244_s3 = inlined_call_operand.hbm [shape: f32[128,384], index: 3, kind: input, shape index: {}]   ;;  %s2245_s4 = inlined_call_operand.hbm [shape: f32[1,384], index: 4, kind: input, shape index: {}]   ;;  %s2246_s5 = inlined_call_operand.hbm [shape: f32[2,16,128], index: 5, kind: output, shape index: {}]  }
   0x1   :  { %2247 = sst [smem:[#allocation18_spill]] %s2241_s0 }
   0x2   :  { %2248 = sst [smem:[#allocation19_spill]] %s2243_s2 }
   0x3   :  { %2249 = sst [smem:[#allocation20_spill]] %s2244_s3 }
   0x4   :  { %2250 = sst [smem:[#allocation21_spill]] %s2245_s4 }
   0x5   :  { %10 = vsyncpa [#allocation3], 0 }
   0x6   :  { %12 = vsyncpa [#allocation3 + $0x1], 0 }
   0x7   :  { %13 = vsyncpa [#allocation6], 0 }
   0x8   :  { %15 = vsyncpa [#allocation6 + $0x1], 0 }
   0x9   :  { %16 = vsyncpa [#allocation9], 0 }
   0xa   :  { %17 = vsyncpa [#allocation4], 0 }
   0xb   :  { %19 = vsyncpa [#allocation4 + $0x1], 0  ;;  %s1915_s18 = smov 0   ;;  %s1917_s19 = smov 0  }
   0xc   :  { %s1919_s20 = smov 0   ;;  %s1921_s21 = smov 0  }
   0xd LB: > { %s1936_s22 = sadd.s32 4294967295, %s1870_s21   ;;  %s1487_s23 = sadd.s32 4294967294, %s1870_s21   ;;  %s1870_s21 = sphi %s1921_s21, %s2267_s21   ;;  %s1866_s20 = sphi %s1919_s20, %s2266_s20   ;;  %s1862_s19 = sphi %s1917_s19, %s2265_s19   ;;  %s1858_s18 = sphi %s1915_s18, %s2264_s18  }
   0xe   : > { %p45_p0 = scmp.ne.s32.totalorder %s1862_s19, %s1858_s18  ;;  %p46_p1 = scmp.eq.s32.totalorder %s1936_s22, 0 }
   0xf   : > { %p158_p2 = scmp.eq.s32.totalorder %s1936_s22, 1  ;;  %p164_p3 = scmp.eq.s32.totalorder %s1487_s23, 1 }
  0x10   : > { %p1945_p4 = por %p46_p1, %p45_p0  ;;  %p1488_p5 = scmp.ge.s32.totalorder %s1870_s21, 1 }
  0x11   : > { %p1950_p6 = por %p164_p3, %p45_p0  ;;  %p171_p7 = scmp.lt.s32.totalorder %s1870_s21, 3 }
  0x12   : > { %s2253_s2 = sld [smem:[#allocation19_spill]]  ;;  %s1872_s30 = smov [#allocation7]  }
  0x13   : > { %p1958_p8 = pnand %p1488_p5, %p171_p7  ;;  %s184_s6 = sshll.u32 %s1872_s30, 4  ;;  %s185_s6 = int_to_ptr.vmem [resolvable:$true] %s184_s6 }
  0x14   : > { %s2256_s3 = sld [smem:[#allocation20_spill]]  ;;  %s1873_s11 = smov 1152  }
  0x15   : > { %p1548_p9 = pneg %p1958_p8  ;;  %s1874_s12 = smov 72  }
  0x16   : > { %s1875_s13 = smov [#allocation8]   ;;  %s1876_s15 = smov 384  }
  0x17   : > { %p1966_p10 = pnand %p1548_p9, %p46_p1  ;;  %s198_s14 = sshll.u32 %s1875_s13, 4  ;;  %s199_s14 = int_to_ptr.vmem [resolvable:$true] %s198_s14 }
  0x18   : > { %s182_s28 = sshll.u32 %s2253_s2, 4  ;;  %s1877_s16 = smov 24   ;;  %s183_s28 = int_to_ptr.hbm [resolvable:$true] %s182_s28 }
  0x19   : > { %1551 = dma.hbm_to_vmem [thread:$0]  (!%p1966_p10), %s183_s28, 36864, %s185_s6, [#allocation6], %s1873_s11, %s1873_s11, %s1874_s12  }
  0x1a   : > { %s196_s10 = sshll.u32 %s2256_s3, 4  ;;  %s2257_s4 = sld [smem:[#allocation21_spill]]  ;;  %s197_s10 = int_to_ptr.hbm [resolvable:$true] %s196_s10 }
  0x1b   : > { %1554 = dma.hbm_to_vmem [thread:$0]  (!%p1966_p10), %s197_s10, 6144, %s199_s14, [#allocation9], %s1876_s15, %s1876_s15, %s1877_s16  }
  0x1c   : > { %s1878_s27 = smov [#allocation10]   ;;  %s1984_s30 = sadd.s32 1, %s1870_s21  }
  0x1d   : > { %s213_s28 = sshll.u32 %s1878_s27, 4  ;;  %s29_s6 = ssub.s32 %s1870_s21, %s1984_s30  ;;  %s214_s28 = int_to_ptr.vmem [resolvable:$true] %s213_s28 }
  0x1e   : > { %s32_s8 = sadd.s32 1, %s1866_s20  ;;  %p30_p12 = scmp.eq.s32.totalorder %s29_s6, 0 }
  0x1f   : > { %p39_p13 = scmp.ne.s32.totalorder %s1866_s20, %s1862_s19  ;;  %p40_p0 = scmp.eq.s32.totalorder %s1870_s21, 0 }
  0x20   : > { %s211_s26 = sshll.u32 %s2257_s4, 4  ;;  %p1572_p3 = scmp.lt.s32.totalorder %s1870_s21, 2  ;;  %s212_s26 = int_to_ptr.hbm [resolvable:$true] %s211_s26 }
  0x21   : > { %1557 = dma.hbm_to_vmem [thread:$0]  (!%p1966_p10), %s212_s26, 48, %s214_s28, [#allocation9]  }
  0x22   : > { %s1994_s9 = scalar_select %p30_p12, %s1866_s20, %s32_s8  }
  0x23   : > { %p41_p5 = por %p40_p0, %p39_p13  ;;  %p1998_p7 = por %p158_p2, %p39_p13 }
  0x24   : > { %2258 = sst [smem:[#allocation17_spill]] %s1994_s9  ;;  %s2003_s7 = sand.u32 1, %s1866_s20  }
  0x25   : > { %s1511_s11 = sshll.u32 %s1870_s21, 5  ;;  %s1493_s12 = sshll.u32 %s2003_s7, 5 }
  0x26   : > { %s2260_s0 = sld [smem:[#allocation18_spill]]  ;;  %s228_s17 = scalar_lea.vmem [#allocation2], %s1493_s12 }
  0x27   : > { %s236_s23 = sshll.u32 %s228_s17, 4  ;;  %p2012_p2 = pnand %p1572_p3, %p41_p5  ;;  %s237_s23 = int_to_ptr.vmem [resolvable:$true] %s236_s23 }
  0x28   : > { %s246_s27 = sand.u32 1, %s1870_s21   ;;  %s225_s28 = scalar_lea.sflag [#allocation3], %s2003_s7 }
  0x29   : > { %p1736_p10 = pneg %p2012_p2 }
  0x2c   : > { %s233_s15 = scalar_lea.hbm %s2260_s0, %s1511_s11  ;;  %s1739_s13 = scalar_lea.hbm %s2260_s0, 64 }
  0x2d   : > { %s234_s16 = sshll.u32 %s233_s15, 4  ;;  %s235_s16 = int_to_ptr.hbm [resolvable:$true] %s234_s16 }
  0x2e   : > { %s1732_s6 = sshra.s32 %s235_s16, 4  ;;  %s1733_s6 = int_to_ptr.hbm [resolvable:$true] %s1732_s6 }
  0x2f   : > { %s1734_s8 = scalar_lea.hbm %s1733_s6, 32  ;;  %p1740_p0 = scmp.lt.s32.totalorder %s1733_s6, %s2260_s0 }
  0x30   : > { %p1735_p9 = scmp.ne.s32.totalorder %s1733_s6, %s1734_s8  ;;  %p1741_p3 = scmp.lt.s32.totalorder %s1739_s13, %s1734_s8 }
  0x32   : > { %p1737_p12 = pnand %p1736_p10, %p1735_p9  ;;  %p1742_p5 = por %p1741_p3, %p1740_p0 }
  0x34   : > { %p1738_p13 = pneg %p1737_p12 }
  0x36   : > { %p1743_p11 = pnand %p1742_p5, %p1738_p13 }
  0x38   : > { %1746 = shalt.err (!%p1743_p11)
}
  0x39   : > { %s1879_s17 = smov 256   ;;  %s1880_s2 = smov 16  }
  0x3a   : > { %1561 = dma.hbm_to_vmem [thread:$0]  (!%p2012_p2), %s235_s16, 512, %s237_s23, %s225_s28, %s1879_s17, %s1879_s17, %s1880_s2  }
  0x3b   : > { %s1496_s3 = sshll.u32 %s2003_s7, 4  ;;  %s1512_s4 = sshll.u32 %s1870_s21, 4 }
  0x3c   : > { %s255_s9 = scalar_lea.hbm %s2242_s1, %s1512_s4  ;;  %s250_s6 = scalar_lea.vmem [#allocation5], %s1496_s3 }
  0x3d   : > { %s256_s14 = sshll.u32 %s255_s9, 4  ;;  %s258_s8 = sshll.u32 %s250_s6, 4  ;;  %s257_s14 = int_to_ptr.hbm [resolvable:$true] %s256_s14  ;;  %s259_s8 = int_to_ptr.vmem [resolvable:$true] %s258_s8 }
  0x3e   : > { %s247_s13 = scalar_lea.sflag [#allocation6], %s246_s27  ;;  %s1762_s15 = sshra.s32 %s257_s14, 4  ;;  %s1763_s15 = int_to_ptr.hbm [resolvable:$true] %s1762_s15 }
  0x3f   : > { %s1764_s0 = scalar_lea.hbm %s1763_s15, 16  ;;  %s1769_s16 = scalar_lea.hbm %s2242_s1, 32 }
  0x40   : > { %p1765_p11 = scmp.ne.s32.totalorder %s1763_s15, %s1764_s0  ;;  %p1770_p13 = scmp.lt.s32.totalorder %s1763_s15, %s2242_s1 }
  0x41   : > { %p1771_p0 = scmp.lt.s32.totalorder %s1769_s16, %s1764_s0 }
  0x42   : > { %p1767_p9 = pnand %p1765_p11, %p1736_p10 }
  0x43   : > { %p1772_p3 = por %p1771_p0, %p1770_p13 }
  0x44   : > { %p1768_p12 = pneg %p1767_p9 }
  0x46   : > { %p1773_p5 = pnand %p1772_p3, %p1768_p12 }
  0x48   : > { %1776 = shalt.err (!%p1773_p5)
}
  0x49   : > { %s1881_s3 = smov 128   ;;  %s1882_s9 = smov 8  }
  0x4a   : > { %1564 = dma.hbm_to_vmem [thread:$0]  (!%p2012_p2), %s257_s14, 256, %s259_s8, %s247_s13, %s1881_s3, %s1881_s3, %s1882_s9  }
  0x4b   : > { %270 = sbr.rel (%p1958_p8) target bundleno = 572 (0x23c), region = 40  ;;  %s2050_s27 = sand.u32 (!%p1958_p8), 1, %s1862_s19  }
  0x4c   : > { %s1500_s28 = sshll.u32 (!%p1958_p8), %s2050_s27, 5  ;;  %s273_s17 = scalar_lea.sflag (!%p1958_p8), [#allocation3], %s2050_s27 }
  0x4d   : > { %s2054_s0 = scalar_lea.vmem (!%p1958_p8), [#allocation2], %s1500_s28 }
  0x50   : > { %1837 = dma.done.wait (%p1945_p4), %s273_s17, 512  }
  0x51   : > { %1839 = vsyncadd (%p1945_p4), %s273_s17, 4294966784  ;;  %s282_s29 = sand.u32 1, %s1936_s22   ;;  %s1501_s26 = sshll.u32 %s2050_s27, 4 }
  0x52   : > { %s283_s11 = scalar_lea.sflag [#allocation6], %s282_s29  ;;  %s2064_s12 = scalar_lea.vmem [#allocation5], %s1501_s26 }
  0x53   : > { %1841 = dma.done.wait (%p1945_p4), %s283_s11, 256  }
  0x54   : > { %1843 = vsyncadd (%p1945_p4), %s283_s11, 4294967040 }
  0x55   : > { %1845 = dma.done.wait (%p46_p1), [#allocation6], 36864  }
  0x56   : > { %1847 = vsyncadd (%p46_p1), [#allocation6], 4294930432 }
  0x57   : > { %1849 = dma.done.wait (%p46_p1), [#allocation9], 6192  }
  0x58   : > { %1851 = vsyncadd (%p46_p1), [#allocation9], 4294961104  ;;  %v483_v0 = vld [vmem:[#allocation7 + $0x438] sm:$0xff]  ;;  %v484_v2 = vld [vmem:[#allocation7 + $0x440] sm:$0xff]  ;;  %vm1056_vm0 = vcmask 1040384   ;;  %vm1081_vm1 = vcmask 1046528  }
  0x59   : > { %v627_v1 = vld [vmem:[#allocation7 + $0x8b8] sm:$0xff]  ;;  %636 = vmatpush.msra.mxu0 %v483_v0  ;;  %v628_v3 = vld [vmem:[#allocation7 + $0x8c0] sm:$0xff]  ;;  %v474_v4 = vld [vmem:[#allocation7 + $0x3f0] sm:$0xff]  ;;  %682 = vmatpush.msra.mxu2 %v484_v2  ;;  %s1513_s24 = sshll.u32 %s1936_s22, 4  ;;  %s333_s13 = scalar_lea.vmem [#allocation11], %s1501_s26 }
  0x5a   : > { %659 = vmatpush.msra.mxu1 %v627_v1  ;;  %v618_v5 = vld [vmem:[#allocation7 + $0x870] sm:$0xff]  ;;  %705 = vmatpush.msra.mxu3 %v628_v3  ;;  %v475_v6 = vld [vmem:[#allocation7 + $0x3f8] sm:$0xff]  ;;  %v465_v8 = vld [vmem:[#allocation7 + $0x3a8] sm:$0xff]  ;;  %s1359_s8 = scalar_lea.hbm %s2246_s5, %s1513_s24  ;;  %s1360_s15 = sshll.u32 %s333_s13, 4  ;;  %s1361_s15 = int_to_ptr.vmem [resolvable:$true] %s1360_s15 }
  0x5b   : > { %v619_v7 = vld [vmem:[#allocation7 + $0x878] sm:$0xff]  ;;  %637 = vmatpush.msra.mxu0 %v474_v4  ;;  %v609_v9 = vld [vmem:[#allocation7 + $0x828] sm:$0xff]  ;;  %v466_v10 = vld [vmem:[#allocation7 + $0x3b0] sm:$0xff]  ;;  %683 = vmatpush.msra.mxu2 %v475_v6  ;;  %s1362_s2 = sshll.u32 %s1359_s8, 4  ;;  %s1348_s22 = scalar_lea.sflag [#allocation4], %s2050_s27  ;;  %s1363_s2 = int_to_ptr.hbm [resolvable:$true] %s1362_s2 }
  0x5c   : > { %660 = vmatpush.msra.mxu1 %v618_v5  ;;  %v610_v11 = vld [vmem:[#allocation7 + $0x830] sm:$0xff]  ;;  %706 = vmatpush.msra.mxu3 %v619_v7  ;;  %v456_v12 = vld [vmem:[#allocation7 + $0x360] sm:$0xff]  ;;  %v457_v14 = vld [vmem:[#allocation7 + $0x368] sm:$0xff]  ;;  %s1806_s7 = sshra.s32 %s1363_s2, 4  ;;  %s1812_s3 = scalar_lea.hbm %s2246_s5, 32  ;;  %s1807_s7 = int_to_ptr.hbm [resolvable:$true] %s1806_s7 }
  0x5d   : > { %v600_v13 = vld [vmem:[#allocation7 + $0x7e0] sm:$0xff]  ;;  %638 = vmatpush.msra.mxu0 %v465_v8  ;;  %v601_v15 = vld [vmem:[#allocation7 + $0x7e8] sm:$0xff]  ;;  %684 = vmatpush.msra.mxu2 %v466_v10  ;;  %v447_v16 = vld [vmem:[#allocation7 + $0x318] sm:$0xff]  ;;  %s1808_s16 = scalar_lea.hbm %s1807_s7, 16  ;;  %p1813_p2 = scmp.lt.s32.totalorder %s1807_s7, %s2246_s5 }
  0x5e   : > { %661 = vmatpush.msra.mxu1 %v609_v9  ;;  %707 = vmatpush.msra.mxu3 %v610_v11  ;;  %v591_v17 = vld [vmem:[#allocation7 + $0x798] sm:$0xff]  ;;  %v448_v18 = vld [vmem:[#allocation7 + $0x320] sm:$0xff]  ;;  %v438_v20 = vld [vmem:[#allocation7 + $0x2d0] sm:$0xff]  ;;  %p1809_p1 = scmp.ne.s32.totalorder %s1807_s7, %s1808_s16  ;;  %p1814_p10 = scmp.lt.s32.totalorder %s1812_s3, %s1808_s16 }
  0x5f   : > { %639 = vmatpush.msra.mxu0 %v456_v12  ;;  %v592_v19 = vld [vmem:[#allocation7 + $0x7a0] sm:$0xff]  ;;  %685 = vmatpush.msra.mxu2 %v457_v14  ;;  %v582_v21 = vld [vmem:[#allocation7 + $0x750] sm:$0xff]  ;;  %v439_v22 = vld [vmem:[#allocation7 + $0x2d8] sm:$0xff] }
  0x60   : > { %662 = vmatpush.msra.mxu1 %v600_v13  ;;  %708 = vmatpush.msra.mxu3 %v601_v15  ;;  %v583_v23 = vld [vmem:[#allocation7 + $0x758] sm:$0xff]  ;;  %v429_v24 = vld [vmem:[#allocation7 + $0x288] sm:$0xff]  ;;  %v430_v26 = vld [vmem:[#allocation7 + $0x290] sm:$0xff]  ;;  %p1810_p4 = pnand %p1809_p1, %p1998_p7  ;;  %p1815_p11 = por %p1814_p10, %p1813_p2 }
  0x61   : > { %640 = vmatpush.msra.mxu0 %v447_v16  ;;  %686 = vmatpush.msra.mxu2 %v448_v18  ;;  %v573_v25 = vld [vmem:[#allocation7 + $0x708] sm:$0xff]  ;;  %v574_v27 = vld [vmem:[#allocation7 + $0x710] sm:$0xff]  ;;  %v420_v28 = vld [vmem:[#allocation7 + $0x240] sm:$0xff] }
  0x62   : > { %663 = vmatpush.msra.mxu1 %v591_v17  ;;  %709 = vmatpush.msra.mxu3 %v592_v19  ;;  %v564_v29 = vld [vmem:[#allocation7 + $0x6c0] sm:$0xff]  ;;  %v421_v30 = vld [vmem:[#allocation7 + $0x248] sm:$0xff]  ;;  %v411_v32 = vld [vmem:[#allocation7 + $0x1f8] sm:$0xff]  ;;  %p1811_p8 = pneg %p1810_p4 }
  0x63   : > { %641 = vmatpush.msra.mxu0 %v438_v20  ;;  %687 = vmatpush.msra.mxu2 %v439_v22  ;;  %v565_v31 = vld [vmem:[#allocation7 + $0x6c8] sm:$0xff]  ;;  %v555_v33 = vld [vmem:[#allocation7 + $0x678] sm:$0xff]  ;;  %v412_v34 = vld [vmem:[#allocation7 + $0x200] sm:$0xff] }
  0x64   : > { %664 = vmatpush.msra.mxu1 %v582_v21  ;;  %710 = vmatpush.msra.mxu3 %v583_v23  ;;  %v556_v35 = vld [vmem:[#allocation7 + $0x680] sm:$0xff]  ;;  %v402_v36 = vld [vmem:[#allocation7 + $0x1b0] sm:$0xff]  ;;  %v403_v38 = vld [vmem:[#allocation7 + $0x1b8] sm:$0xff]  ;;  %p1816_p9 = pnand %p1815_p11, %p1811_p8 }
  0x65   : > { %642 = vmatpush.msra.mxu0 %v429_v24  ;;  %688 = vmatpush.msra.mxu2 %v430_v26  ;;  %v546_v37 = vld [vmem:[#allocation7 + $0x630] sm:$0xff]  ;;  %v547_v39 = vld [vmem:[#allocation7 + $0x638] sm:$0xff]  ;;  %v393_v40 = vld [vmem:[#allocation7 + $0x168] sm:$0xff] }
  0x66   : > { %665 = vmatpush.msra.mxu1 %v573_v25  ;;  %711 = vmatpush.msra.mxu3 %v574_v27  ;;  %v537_v41 = vld [vmem:[#allocation7 + $0x5e8] sm:$0xff]  ;;  %v394_v42 = vld [vmem:[#allocation7 + $0x170] sm:$0xff]  ;;  %v384_v44 = vld [vmem:[#allocation7 + $0x120] sm:$0xff] }
  0x67   : > { %643 = vmatpush.msra.mxu0 %v420_v28  ;;  %689 = vmatpush.msra.mxu2 %v421_v30  ;;  %v538_v43 = vld [vmem:[#allocation7 + $0x5f0] sm:$0xff]  ;;  %v528_v45 = vld [vmem:[#allocation7 + $0x5a0] sm:$0xff]  ;;  %v385_v46 = vld [vmem:[#allocation7 + $0x128] sm:$0xff] }
  0x68   : > { %666 = vmatpush.msra.mxu1 %v564_v29  ;;  %712 = vmatpush.msra.mxu3 %v565_v31  ;;  %v529_v47 = vld [vmem:[#allocation7 + $0x5a8] sm:$0xff]  ;;  %v375_v48 = vld [vmem:[#allocation7 + $0xd8] sm:$0xff]  ;;  %v376_v50 = vld [vmem:[#allocation7 + $0xe0] sm:$0xff] }
  0x69   : > { %644 = vmatpush.msra.mxu0 %v411_v32  ;;  %690 = vmatpush.msra.mxu2 %v412_v34  ;;  %v519_v49 = vld [vmem:[#allocation7 + $0x558] sm:$0xff]  ;;  %v520_v51 = vld [vmem:[#allocation7 + $0x560] sm:$0xff]  ;;  %v366_v52 = vld [vmem:[#allocation7 + $0x90] sm:$0xff] }
  0x6a   : > { %667 = vmatpush.msra.mxu1 %v555_v33  ;;  %713 = vmatpush.msra.mxu3 %v556_v35  ;;  %v510_v53 = vld [vmem:[#allocation7 + $0x510] sm:$0xff]  ;;  %v367_v54 = vld [vmem:[#allocation7 + $0x98] sm:$0xff]  ;;  %v357_v56 = vld [vmem:[#allocation7 + $0x48] sm:$0xff] }
  0x6b   : > { %645 = vmatpush.msra.mxu0 %v402_v36  ;;  %691 = vmatpush.msra.mxu2 %v403_v38  ;;  %v511_v55 = vld [vmem:[#allocation7 + $0x518] sm:$0xff]  ;;  %v501_v57 = vld [vmem:[#allocation7 + $0x4c8] sm:$0xff]  ;;  %v358_v58 = vld [vmem:[#allocation7 + $0x50] sm:$0xff] }
  0x6c   : > { %668 = vmatpush.msra.mxu1 %v546_v37  ;;  %714 = vmatpush.msra.mxu3 %v547_v39  ;;  %v502_v59 = vld [vmem:[#allocation7 + $0x4d0] sm:$0xff]  ;;  %v348_v60 = vld [vmem:[#allocation7] sm:$0xff]  ;;  %v349_v62 = vld [vmem:[#allocation7 + $0x8] sm:$0xff] }
  0x6d   : > { %646 = vmatpush.msra.mxu0 %v393_v40  ;;  %692 = vmatpush.msra.mxu2 %v394_v42  ;;  %v492_v61 = vld [vmem:[#allocation7 + $0x480] sm:$0xff]  ;;  %v493_v63 = vld [vmem:[#allocation7 + $0x488] sm:$0xff]  ;;  %v486_v2 = vld [vmem:[#allocation7 + $0x450] sm:$0xff] }
  0x6e   : > { %669 = vmatpush.msra.mxu1 %v537_v41  ;;  %715 = vmatpush.msra.mxu3 %v538_v43  ;;  %v485_v0 = vld [vmem:[#allocation7 + $0x448] sm:$0xff]  ;;  %v630_v3 = vld [vmem:[#allocation7 + $0x8d0] sm:$0xff]  ;;  %v476_v4 = vld [vmem:[#allocation7 + $0x400] sm:$0xff] }
  0x6f   : > { %647 = vmatpush.msra.mxu0 %v384_v44  ;;  %693 = vmatpush.msra.mxu2 %v385_v46  ;;  %v629_v1 = vld [vmem:[#allocation7 + $0x8c8] sm:$0xff]  ;;  %v620_v5 = vld [vmem:[#allocation7 + $0x880] sm:$0xff]  ;;  %v467_v8 = vld [vmem:[#allocation7 + $0x3b8] sm:$0xff] }
  0x70   : > { %670 = vmatpush.msra.mxu1 %v528_v45  ;;  %716 = vmatpush.msra.mxu3 %v529_v47  ;;  %v477_v6 = vld [vmem:[#allocation7 + $0x408] sm:$0xff]  ;;  %v611_v9 = vld [vmem:[#allocation7 + $0x838] sm:$0xff]  ;;  %v468_v10 = vld [vmem:[#allocation7 + $0x3c0] sm:$0xff] }
  0x71   : > { %648 = vmatpush.msra.mxu0 %v375_v48  ;;  %694 = vmatpush.msra.mxu2 %v376_v50  ;;  %v621_v7 = vld [vmem:[#allocation7 + $0x888] sm:$0xff]  ;;  %v612_v11 = vld [vmem:[#allocation7 + $0x840] sm:$0xff]  ;;  %v458_v12 = vld [vmem:[#allocation7 + $0x370] sm:$0xff] }
  0x72   : > { %671 = vmatpush.msra.mxu1 %v519_v49  ;;  %717 = vmatpush.msra.mxu3 %v520_v51  ;;  %v602_v13 = vld [vmem:[#allocation7 + $0x7f0] sm:$0xff]  ;;  %v459_v14 = vld [vmem:[#allocation7 + $0x378] sm:$0xff]  ;;  %v449_v16 = vld [vmem:[#allocation7 + $0x328] sm:$0xff] }
  0x73   : > { %649 = vmatpush.msra.mxu0 %v366_v52  ;;  %695 = vmatpush.msra.mxu2 %v367_v54  ;;  %v603_v15 = vld [vmem:[#allocation7 + $0x7f8] sm:$0xff]  ;;  %v593_v17 = vld [vmem:[#allocation7 + $0x7a8] sm:$0xff]  ;;  %v450_v18 = vld [vmem:[#allocation7 + $0x330] sm:$0xff] }
  0x74   : > { %672 = vmatpush.msra.mxu1 %v510_v53  ;;  %718 = vmatpush.msra.mxu3 %v511_v55  ;;  %v594_v19 = vld [vmem:[#allocation7 + $0x7b0] sm:$0xff]  ;;  %v440_v20 = vld [vmem:[#allocation7 + $0x2e0] sm:$0xff]  ;;  %v441_v22 = vld [vmem:[#allocation7 + $0x2e8] sm:$0xff] }
  0x75   : > { %650 = vmatpush.msra.mxu0 %v357_v56  ;;  %696 = vmatpush.msra.mxu2 %v358_v58  ;;  %v584_v21 = vld [vmem:[#allocation7 + $0x760] sm:$0xff]  ;;  %v585_v23 = vld [vmem:[#allocation7 + $0x768] sm:$0xff]  ;;  %v431_v24 = vld [vmem:[#allocation7 + $0x298] sm:$0xff] }
  0x76   : > { %673 = vmatpush.msra.mxu1 %v501_v57  ;;  %719 = vmatpush.msra.mxu3 %v502_v59  ;;  %v575_v25 = vld [vmem:[#allocation7 + $0x718] sm:$0xff]  ;;  %v432_v26 = vld [vmem:[#allocation7 + $0x2a0] sm:$0xff]  ;;  %v422_v28 = vld [vmem:[#allocation7 + $0x250] sm:$0xff] }
  0x77   : > { %651 = vmatpush.msra.mxu0 %v348_v60  ;;  %697 = vmatpush.msra.mxu2 %v349_v62  ;;  %v576_v27 = vld [vmem:[#allocation7 + $0x720] sm:$0xff]  ;;  %v566_v29 = vld [vmem:[#allocation7 + $0x6d0] sm:$0xff]  ;;  %v423_v30 = vld [vmem:[#allocation7 + $0x258] sm:$0xff] }
  0x78   : > { %674 = vmatpush.msra.mxu1 %v492_v61  ;;  %720 = vmatpush.msra.mxu3 %v493_v63  ;;  %v567_v31 = vld [vmem:[#allocation7 + $0x6d8] sm:$0xff]  ;;  %v413_v32 = vld [vmem:[#allocation7 + $0x208] sm:$0xff]  ;;  %v414_v34 = vld [vmem:[#allocation7 + $0x210] sm:$0xff] }
  0x79   : > { %728 = vmatpush.msrb.mxu0 %v485_v0  ;;  %774 = vmatpush.msrb.mxu2 %v486_v2  ;;  %v557_v33 = vld [vmem:[#allocation7 + $0x688] sm:$0xff]  ;;  %v558_v35 = vld [vmem:[#allocation7 + $0x690] sm:$0xff]  ;;  %v404_v36 = vld [vmem:[#allocation7 + $0x1c0] sm:$0xff] }
  0x7a   : > { %751 = vmatpush.msrb.mxu1 %v629_v1  ;;  %797 = vmatpush.msrb.mxu3 %v630_v3  ;;  %v548_v37 = vld [vmem:[#allocation7 + $0x640] sm:$0xff]  ;;  %v405_v38 = vld [vmem:[#allocation7 + $0x1c8] sm:$0xff]  ;;  %v395_v40 = vld [vmem:[#allocation7 + $0x178] sm:$0xff] }
  0x7b   : > { %729 = vmatpush.msrb.mxu0 %v476_v4  ;;  %775 = vmatpush.msrb.mxu2 %v477_v6  ;;  %v549_v39 = vld [vmem:[#allocation7 + $0x648] sm:$0xff]  ;;  %v539_v41 = vld [vmem:[#allocation7 + $0x5f8] sm:$0xff]  ;;  %v396_v42 = vld [vmem:[#allocation7 + $0x180] sm:$0xff] }
  0x7c   : > { %752 = vmatpush.msrb.mxu1 %v620_v5  ;;  %798 = vmatpush.msrb.mxu3 %v621_v7  ;;  %v540_v43 = vld [vmem:[#allocation7 + $0x600] sm:$0xff]  ;;  %v386_v44 = vld [vmem:[#allocation7 + $0x130] sm:$0xff]  ;;  %v387_v46 = vld [vmem:[#allocation7 + $0x138] sm:$0xff] }
  0x7d   : > { %730 = vmatpush.msrb.mxu0 %v467_v8  ;;  %776 = vmatpush.msrb.mxu2 %v468_v10  ;;  %v530_v45 = vld [vmem:[#allocation7 + $0x5b0] sm:$0xff]  ;;  %v531_v47 = vld [vmem:[#allocation7 + $0x5b8] sm:$0xff]  ;;  %v2079_v48 = vld [vmem:[%s2054_s0] sm:$0xff] }
  0x7e   : > { %753 = vmatpush.msrb.mxu1 %v611_v9  ;;  %799 = vmatpush.msrb.mxu3 %v612_v11  ;;  %v2082_v49 = vld [vmem:[%s2054_s0 + $0x8] sm:$0xff]  ;;  %v378_v52 = vld [vmem:[#allocation7 + $0xf0] sm:$0xff]  ;;  %v368_v54 = vld [vmem:[#allocation7 + $0xa0] sm:$0xff] }
  0x7f   : > { %731 = vmatpush.msrb.mxu0 %v458_v12  ;;  %777 = vmatpush.msrb.mxu2 %v459_v14  ;;  %v377_v50 = vld [vmem:[#allocation7 + $0xe8] sm:$0xff]  ;;  %v522_v53 = vld [vmem:[#allocation7 + $0x570] sm:$0xff]  ;;  %v512_v55 = vld [vmem:[#allocation7 + $0x520] sm:$0xff] }
  0x80   : > { %754 = vmatpush.msrb.mxu1 %v602_v13  ;;  %800 = vmatpush.msrb.mxu3 %v603_v15  ;;  %v521_v51 = vld [vmem:[#allocation7 + $0x568] sm:$0xff]  ;;  %v359_v58 = vld [vmem:[#allocation7 + $0x58] sm:$0xff]  ;;  %v360_v60 = vld [vmem:[#allocation7 + $0x60] sm:$0xff] }
  0x81   : > { %732 = vmatpush.msrb.mxu0 %v449_v16  ;;  %778 = vmatpush.msrb.mxu2 %v450_v18  ;;  %v369_v56 = vld [vmem:[#allocation7 + $0xa8] sm:$0xff]  ;;  %v503_v59 = vld [vmem:[#allocation7 + $0x4d8] sm:$0xff]  ;;  %v504_v61 = vld [vmem:[#allocation7 + $0x4e0] sm:$0xff] }
  0x82   : > { %755 = vmatpush.msrb.mxu1 %v593_v17  ;;  %801 = vmatpush.msrb.mxu3 %v594_v19  ;;  %v513_v57 = vld [vmem:[#allocation7 + $0x528] sm:$0xff]  ;;  %v350_v62 = vld [vmem:[#allocation7 + $0x10] sm:$0xff]  ;;  %v351_v0 = vld [vmem:[#allocation7 + $0x18] sm:$0xff] }
  0x83   : > { %733 = vmatpush.msrb.mxu0 %v440_v20  ;;  %779 = vmatpush.msrb.mxu2 %v441_v22  ;;  %v494_v63 = vld [vmem:[#allocation7 + $0x490] sm:$0xff]  ;;  %v495_v1 = vld [vmem:[#allocation7 + $0x498] sm:$0xff]  ;;  %v488_v6 = vld [vmem:[#allocation7 + $0x460] sm:$0xff] }
  0x84   : > { %756 = vmatpush.msrb.mxu1 %v584_v21  ;;  %802 = vmatpush.msrb.mxu3 %v585_v23  ;;  %v2089_v2 = vld [vmem:[%s2054_s0 + $0x10] sm:$0xff]  ;;  %v2092_v3 = vld [vmem:[%s2054_s0 + $0x18] sm:$0xff]  ;;  %v632_v7 = vld [vmem:[#allocation7 + $0x8e0] sm:$0xff] }
  0x85   : > { %734 = vmatpush.msrb.mxu0 %v431_v24  ;;  %780 = vmatpush.msrb.mxu2 %v432_v26  ;;  %v487_v4 = vld [vmem:[#allocation7 + $0x458] sm:$0xff]  ;;  %v478_v8 = vld [vmem:[#allocation7 + $0x410] sm:$0xff]  ;;  %v469_v12 = vld [vmem:[#allocation7 + $0x3c8] sm:$0xff] }
  0x86   : > { %757 = vmatpush.msrb.mxu1 %v575_v25  ;;  %803 = vmatpush.msrb.mxu3 %v576_v27  ;;  %v631_v5 = vld [vmem:[#allocation7 + $0x8d8] sm:$0xff]  ;;  %v622_v9 = vld [vmem:[#allocation7 + $0x890] sm:$0xff]  ;;  %v613_v13 = vld [vmem:[#allocation7 + $0x848] sm:$0xff] }
  0x87   : > { %735 = vmatpush.msrb.mxu0 %v422_v28  ;;  %781 = vmatpush.msrb.mxu2 %v423_v30  ;;  %v479_v10 = vld [vmem:[#allocation7 + $0x418] sm:$0xff]  ;;  %v470_v14 = vld [vmem:[#allocation7 + $0x3d0] sm:$0xff]  ;;  %v460_v16 = vld [vmem:[#allocation7 + $0x380] sm:$0xff] }
  0x88   : > { %758 = vmatpush.msrb.mxu1 %v566_v29  ;;  %804 = vmatpush.msrb.mxu3 %v567_v31  ;;  %v623_v11 = vld [vmem:[#allocation7 + $0x898] sm:$0xff]  ;;  %v614_v15 = vld [vmem:[#allocation7 + $0x850] sm:$0xff]  ;;  %v604_v17 = vld [vmem:[#allocation7 + $0x800] sm:$0xff] }
  0x89   : > { %736 = vmatpush.msrb.mxu0 %v413_v32  ;;  %782 = vmatpush.msrb.mxu2 %v414_v34  ;;  %v461_v18 = vld [vmem:[#allocation7 + $0x388] sm:$0xff]  ;;  %v451_v20 = vld [vmem:[#allocation7 + $0x338] sm:$0xff]  ;;  %v452_v22 = vld [vmem:[#allocation7 + $0x340] sm:$0xff] }
  0x8a   : > { %759 = vmatpush.msrb.mxu1 %v557_v33  ;;  %805 = vmatpush.msrb.mxu3 %v558_v35  ;;  %v605_v19 = vld [vmem:[#allocation7 + $0x808] sm:$0xff]  ;;  %v595_v21 = vld [vmem:[#allocation7 + $0x7b8] sm:$0xff]  ;;  %v596_v23 = vld [vmem:[#allocation7 + $0x7c0] sm:$0xff] }
  0x8b   : > { %737 = vmatpush.msrb.mxu0 %v404_v36  ;;  %783 = vmatpush.msrb.mxu2 %v405_v38  ;;  %v442_v24 = vld [vmem:[#allocation7 + $0x2f0] sm:$0xff]  ;;  %v443_v26 = vld [vmem:[#allocation7 + $0x2f8] sm:$0xff]  ;;  %v433_v28 = vld [vmem:[#allocation7 + $0x2a8] sm:$0xff] }
  0x8c   : > { %760 = vmatpush.msrb.mxu1 %v548_v37  ;;  %806 = vmatpush.msrb.mxu3 %v549_v39  ;;  %v586_v25 = vld [vmem:[#allocation7 + $0x770] sm:$0xff]  ;;  %v587_v27 = vld [vmem:[#allocation7 + $0x778] sm:$0xff]  ;;  %v577_v29 = vld [vmem:[#allocation7 + $0x728] sm:$0xff] }
  0x8d   : > { %738 = vmatpush.msrb.mxu0 %v395_v40  ;;  %784 = vmatpush.msrb.mxu2 %v396_v42  ;;  %v434_v30 = vld [vmem:[#allocation7 + $0x2b0] sm:$0xff]  ;;  %v424_v32 = vld [vmem:[#allocation7 + $0x260] sm:$0xff]  ;;  %v425_v34 = vld [vmem:[#allocation7 + $0x268] sm:$0xff] }
  0x8e   : > { %761 = vmatpush.msrb.mxu1 %v539_v41  ;;  %807 = vmatpush.msrb.mxu3 %v540_v43  ;;  %v578_v31 = vld [vmem:[#allocation7 + $0x730] sm:$0xff]  ;;  %v568_v33 = vld [vmem:[#allocation7 + $0x6e0] sm:$0xff]  ;;  %v569_v35 = vld [vmem:[#allocation7 + $0x6e8] sm:$0xff] }
  0x8f   : > { %739 = vmatpush.msrb.mxu0 %v386_v44  ;;  %785 = vmatpush.msrb.mxu2 %v387_v46  ;;  %v415_v36 = vld [vmem:[#allocation7 + $0x218] sm:$0xff]  ;;  %v416_v38 = vld [vmem:[#allocation7 + $0x220] sm:$0xff]  ;;  %v406_v40 = vld [vmem:[#allocation7 + $0x1d0] sm:$0xff] }
  0x90   : > { %762 = vmatpush.msrb.mxu1 %v530_v45  ;;  %808 = vmatpush.msrb.mxu3 %v531_v47  ;;  %v559_v37 = vld [vmem:[#allocation7 + $0x698] sm:$0xff]  ;;  %v560_v39 = vld [vmem:[#allocation7 + $0x6a0] sm:$0xff]  ;;  %v550_v41 = vld [vmem:[#allocation7 + $0x650] sm:$0xff] }
  0x91   : > { %698 = vmatmul.f32.vlgmr.msra.gmra.mxu2 %v2079_v48  ;;  %721 = vmatmul.f32.vlgmr.msra.gmra.mxu3 %v2082_v49  ;;  %v407_v42 = vld [vmem:[#allocation7 + $0x1d8] sm:$0xff]  ;;  %v397_v44 = vld [vmem:[#allocation7 + $0x188] sm:$0xff]  ;;  %v398_v46 = vld [vmem:[#allocation7 + $0x190] sm:$0xff] }
  0x92   : > { %740 = vmatpush.msrb.mxu0 %v377_v50  ;;  %763 = vmatpush.msrb.mxu1 %v521_v51  ;;  %v551_v43 = vld [vmem:[#allocation7 + $0x658] sm:$0xff]  ;;  %v541_v45 = vld [vmem:[#allocation7 + $0x608] sm:$0xff]  ;;  %v542_v47 = vld [vmem:[#allocation7 + $0x610] sm:$0xff] }
  0x93   : > { %786 = vmatpush.msrb.mxu2 %v378_v52  ;;  %809 = vmatpush.msrb.mxu3 %v522_v53  ;;  %v388_v50 = vld [vmem:[#allocation7 + $0x140] sm:$0xff]  ;;  %v389_v52 = vld [vmem:[#allocation7 + $0x148] sm:$0xff] }
  0x94   : > { %741 = vmatpush.msrb.mxu0 %v368_v54  ;;  %764 = vmatpush.msrb.mxu1 %v512_v55  ;;  %v532_v51 = vld [vmem:[#allocation7 + $0x5c0] sm:$0xff]  ;;  %v533_v53 = vld [vmem:[#allocation7 + $0x5c8] sm:$0xff]  ;;  %v379_v54 = vld [vmem:[#allocation7 + $0xf8] sm:$0xff] }
  0x95   : > { %787 = vmatpush.msrb.mxu2 %v369_v56  ;;  %810 = vmatpush.msrb.mxu3 %v513_v57  ;;  %v523_v55 = vld [vmem:[#allocation7 + $0x578] sm:$0xff]  ;;  %v380_v56 = vld [vmem:[#allocation7 + $0x100] sm:$0xff] }
  0x96   : > { %742 = vmatpush.msrb.mxu0 %v359_v58  ;;  %765 = vmatpush.msrb.mxu1 %v503_v59  ;;  %v524_v57 = vld [vmem:[#allocation7 + $0x580] sm:$0xff]  ;;  %v370_v58 = vld [vmem:[#allocation7 + $0xb0] sm:$0xff] }
  0x97   : > { %788 = vmatpush.msrb.mxu2 %v360_v60  ;;  %811 = vmatpush.msrb.mxu3 %v504_v61  ;;  %v514_v59 = vld [vmem:[#allocation7 + $0x530] sm:$0xff]  ;;  %v371_v60 = vld [vmem:[#allocation7 + $0xb8] sm:$0xff] }
  0x98   : > { %652 = vmatmul.f32.vlgmr.msra.gmra.mxu0 %v2079_v48  ;;  %675 = vmatmul.f32.vlgmr.msra.gmra.mxu1 %v2082_v49  ;;  %v515_v61 = vld [vmem:[#allocation7 + $0x538] sm:$0xff] }
  0x99   : > { %743 = vmatpush.msrb.mxu0 %v350_v62  ;;  %766 = vmatpush.msrb.mxu1 %v494_v63  ;;  %v361_v62 = vld [vmem:[#allocation7 + $0x68] sm:$0xff] }
  0x9a   : > { %789 = vmatpush.msrb.mxu2 %v351_v0  ;;  %812 = vmatpush.msrb.mxu3 %v495_v1  ;;  %v505_v63 = vld [vmem:[#allocation7 + $0x4e8] sm:$0xff]  ;;  %v362_v0 = vld [vmem:[#allocation7 + $0x70] sm:$0xff] }
  0x9b   : > { %701 = vmatmul.f32.gmra.mxu2 %v2089_v2  ;;  %724 = vmatmul.f32.gmra.mxu3 %v2092_v3  ;;  %v506_v1 = vld [vmem:[#allocation7 + $0x4f0] sm:$0xff] }
  0x9c   : > { %820 = vmatpush.msra.mxu0 %v487_v4  ;;  %843 = vmatpush.msra.mxu1 %v631_v5  ;;  %v352_v4 = vld [vmem:[#allocation7 + $0x20] sm:$0xff] }
  0x9d   : > { %866 = vmatpush.msra.mxu2 %v488_v6  ;;  %889 = vmatpush.msra.mxu3 %v632_v7  ;;  %v496_v5 = vld [vmem:[#allocation7 + $0x4a0] sm:$0xff]  ;;  %v353_v6 = vld [vmem:[#allocation7 + $0x28] sm:$0xff] }
  0x9e   : > { %821 = vmatpush.msra.mxu0 %v478_v8  ;;  %844 = vmatpush.msra.mxu1 %v622_v9  ;;  %v497_v7 = vld [vmem:[#allocation7 + $0x4a8] sm:$0xff] }
  0x9f   : > { %867 = vmatpush.msra.mxu2 %v479_v10  ;;  %890 = vmatpush.msra.mxu3 %v623_v11  ;;  %v489_v8 = vld [vmem:[#allocation7 + $0x468] sm:$0xff]  ;;  %v490_v10 = vld [vmem:[#allocation7 + $0x470] sm:$0xff] }
  0xa0   : > { %822 = vmatpush.msra.mxu0 %v469_v12  ;;  %845 = vmatpush.msra.mxu1 %v613_v13  ;;  %v633_v9 = vld [vmem:[#allocation7 + $0x8e8] sm:$0xff]  ;;  %v634_v11 = vld [vmem:[#allocation7 + $0x8f0] sm:$0xff]  ;;  %v480_v12 = vld [vmem:[#allocation7 + $0x420] sm:$0xff] }
  0xa1   : > { %868 = vmatpush.msra.mxu2 %v470_v14  ;;  %891 = vmatpush.msra.mxu3 %v614_v15  ;;  %v624_v13 = vld [vmem:[#allocation7 + $0x8a0] sm:$0xff]  ;;  %v481_v14 = vld [vmem:[#allocation7 + $0x428] sm:$0xff] }
  0xa2   : > { %823 = vmatpush.msra.mxu0 %v460_v16  ;;  %846 = vmatpush.msra.mxu1 %v604_v17  ;;  %v625_v15 = vld [vmem:[#allocation7 + $0x8a8] sm:$0xff]  ;;  %v471_v16 = vld [vmem:[#allocation7 + $0x3d8] sm:$0xff] }
  0xa3   : > { %869 = vmatpush.msra.mxu2 %v461_v18  ;;  %892 = vmatpush.msra.mxu3 %v605_v19  ;;  %v615_v17 = vld [vmem:[#allocation7 + $0x858] sm:$0xff]  ;;  %v472_v18 = vld [vmem:[#allocation7 + $0x3e0] sm:$0xff] }
  0xa4   : > { %655 = vmatmul.f32.gmra.mxu0 %v2089_v2  ;;  %678 = vmatmul.f32.gmra.mxu1 %v2092_v3  ;;  %v616_v19 = vld [vmem:[#allocation7 + $0x860] sm:$0xff] }
  0xa5   : > { %824 = vmatpush.msra.mxu0 %v451_v20  ;;  %847 = vmatpush.msra.mxu1 %v595_v21  ;;  %v462_v20 = vld [vmem:[#allocation7 + $0x390] sm:$0xff] }
  0xa6   : > { %870 = vmatpush.msra.mxu2 %v452_v22  ;;  %893 = vmatpush.msra.mxu3 %v596_v23  ;;  %v606_v21 = vld [vmem:[#allocation7 + $0x810] sm:$0xff]  ;;  %v463_v22 = vld [vmem:[#allocation7 + $0x398] sm:$0xff] }
  0xa7   : > { %825 = vmatpush.msra.mxu0 %v442_v24  ;;  %848 = vmatpush.msra.mxu1 %v586_v25  ;;  %v607_v23 = vld [vmem:[#allocation7 + $0x818] sm:$0xff]  ;;  %v453_v24 = vld [vmem:[#allocation7 + $0x348] sm:$0xff] }
  0xa8   : > { %871 = vmatpush.msra.mxu2 %v443_v26  ;;  %894 = vmatpush.msra.mxu3 %v587_v27  ;;  %v597_v25 = vld [vmem:[#allocation7 + $0x7c8] sm:$0xff]  ;;  %v454_v26 = vld [vmem:[#allocation7 + $0x350] sm:$0xff] }
  0xa9   : > { %826 = vmatpush.msra.mxu0 %v433_v28  ;;  %849 = vmatpush.msra.mxu1 %v577_v29  ;;  %v598_v27 = vld [vmem:[#allocation7 + $0x7d0] sm:$0xff]  ;;  %v444_v28 = vld [vmem:[#allocation7 + $0x300] sm:$0xff] }
  0xaa   : > { %872 = vmatpush.msra.mxu2 %v434_v30  ;;  %895 = vmatpush.msra.mxu3 %v578_v31  ;;  %v588_v29 = vld [vmem:[#allocation7 + $0x780] sm:$0xff]  ;;  %v445_v30 = vld [vmem:[#allocation7 + $0x308] sm:$0xff] }
  0xab   : > { %827 = vmatpush.msra.mxu0 %v424_v32  ;;  %850 = vmatpush.msra.mxu1 %v568_v33  ;;  %v589_v31 = vld [vmem:[#allocation7 + $0x788] sm:$0xff]  ;;  %v435_v32 = vld [vmem:[#allocation7 + $0x2b8] sm:$0xff] }
  0xac   : > { %873 = vmatpush.msra.mxu2 %v425_v34  ;;  %896 = vmatpush.msra.mxu3 %v569_v35  ;;  %v579_v33 = vld [vmem:[#allocation7 + $0x738] sm:$0xff]  ;;  %v436_v34 = vld [vmem:[#allocation7 + $0x2c0] sm:$0xff] }
  0xad   : > { %744 = vmatmul.f32.vlgmr.msrb.gmra.mxu0 %v2079_v48  ;;  %767 = vmatmul.f32.vlgmr.msrb.gmra.mxu1 %v2082_v49  ;;  %v580_v35 = vld [vmem:[#allocation7 + $0x740] sm:$0xff] }
  0xae   : > { %828 = vmatpush.msra.mxu0 %v415_v36  ;;  %851 = vmatpush.msra.mxu1 %v559_v37  ;;  %v426_v36 = vld [vmem:[#allocation7 + $0x270] sm:$0xff] }
  0xaf   : > { %874 = vmatpush.msra.mxu2 %v416_v38  ;;  %897 = vmatpush.msra.mxu3 %v560_v39  ;;  %v570_v37 = vld [vmem:[#allocation7 + $0x6f0] sm:$0xff]  ;;  %v427_v38 = vld [vmem:[#allocation7 + $0x278] sm:$0xff] }
  0xb0   : > { %829 = vmatpush.msra.mxu0 %v406_v40  ;;  %852 = vmatpush.msra.mxu1 %v550_v41  ;;  %v571_v39 = vld [vmem:[#allocation7 + $0x6f8] sm:$0xff]  ;;  %v417_v40 = vld [vmem:[#allocation7 + $0x228] sm:$0xff] }
  0xb1   : > { %875 = vmatpush.msra.mxu2 %v407_v42  ;;  %898 = vmatpush.msra.mxu3 %v551_v43  ;;  %v561_v41 = vld [vmem:[#allocation7 + $0x6a8] sm:$0xff]  ;;  %v418_v42 = vld [vmem:[#allocation7 + $0x230] sm:$0xff] }
  0xb2   : > { %830 = vmatpush.msra.mxu0 %v397_v44  ;;  %853 = vmatpush.msra.mxu1 %v541_v45  ;;  %v562_v43 = vld [vmem:[#allocation7 + $0x6b0] sm:$0xff]  ;;  %v408_v44 = vld [vmem:[#allocation7 + $0x1e0] sm:$0xff] }
  0xb3   : > { %876 = vmatpush.msra.mxu2 %v398_v46  ;;  %899 = vmatpush.msra.mxu3 %v542_v47  ;;  %v552_v45 = vld [vmem:[#allocation7 + $0x660] sm:$0xff]  ;;  %v409_v46 = vld [vmem:[#allocation7 + $0x1e8] sm:$0xff] }
  0xb4   : > { %831 = vmatpush.msra.mxu0 %v388_v50  ;;  %854 = vmatpush.msra.mxu1 %v532_v51  ;;  %v553_v47 = vld [vmem:[#allocation7 + $0x668] sm:$0xff]  ;;  %v399_v50 = vld [vmem:[#allocation7 + $0x198] sm:$0xff] }
  0xb5   : > { %877 = vmatpush.msra.mxu2 %v389_v52  ;;  %900 = vmatpush.msra.mxu3 %v533_v53  ;;  %v543_v51 = vld [vmem:[#allocation7 + $0x618] sm:$0xff]  ;;  %v400_v52 = vld [vmem:[#allocation7 + $0x1a0] sm:$0xff] }
  0xb6   : > { %747 = vmatmul.f32.gmra.mxu0 %v2089_v2  ;;  %770 = vmatmul.f32.gmra.mxu1 %v2092_v3  ;;  %v544_v53 = vld [vmem:[#allocation7 + $0x620] sm:$0xff] }
  0xb7   : > { %832 = vmatpush.msra.mxu0 %v379_v54  ;;  %855 = vmatpush.msra.mxu1 %v523_v55  ;;  %v390_v54 = vld [vmem:[#allocation7 + $0x150] sm:$0xff] }
  0xb8   : > { %878 = vmatpush.msra.mxu2 %v380_v56  ;;  %901 = vmatpush.msra.mxu3 %v524_v57  ;;  %v534_v55 = vld [vmem:[#allocation7 + $0x5d0] sm:$0xff]  ;;  %v391_v56 = vld [vmem:[#allocation7 + $0x158] sm:$0xff] }
  0xb9   : > { %833 = vmatpush.msra.mxu0 %v370_v58  ;;  %856 = vmatpush.msra.mxu1 %v514_v59  ;;  %v535_v57 = vld [vmem:[#allocation7 + $0x5d8] sm:$0xff]  ;;  %v381_v58 = vld [vmem:[#allocation7 + $0x108] sm:$0xff] }
  0xba   : > { %879 = vmatpush.msra.mxu2 %v371_v60  ;;  %902 = vmatpush.msra.mxu3 %v515_v61  ;;  %v525_v59 = vld [vmem:[#allocation7 + $0x588] sm:$0xff]  ;;  %v382_v60 = vld [vmem:[#allocation7 + $0x110] sm:$0xff] }
  0xbb   : > { %834 = vmatpush.msra.mxu0 %v361_v62  ;;  %857 = vmatpush.msra.mxu1 %v505_v63  ;;  %v526_v61 = vld [vmem:[#allocation7 + $0x590] sm:$0xff]  ;;  %v372_v62 = vld [vmem:[#allocation7 + $0xc0] sm:$0xff] }
  0xbc   : > { %880 = vmatpush.msra.mxu2 %v362_v0  ;;  %903 = vmatpush.msra.mxu3 %v506_v1  ;;  %v516_v63 = vld [vmem:[#allocation7 + $0x540] sm:$0xff]  ;;  %v373_v0 = vld [vmem:[#allocation7 + $0xc8] sm:$0xff] }
  0xbd   : > { %790 = vmatmul.f32.vlgmr.msrb.gmra.mxu2 %v2079_v48  ;;  %813 = vmatmul.f32.vlgmr.msrb.gmra.mxu3 %v2082_v49  ;;  %v517_v1 = vld [vmem:[#allocation7 + $0x548] sm:$0xff] }
  0xbe   : > { %835 = vmatpush.msra.mxu0 %v352_v4  ;;  %858 = vmatpush.msra.mxu1 %v496_v5  ;;  %v363_v4 = vld [vmem:[#allocation7 + $0x78] sm:$0xff] }
  0xbf   : > { %881 = vmatpush.msra.mxu2 %v353_v6  ;;  %904 = vmatpush.msra.mxu3 %v497_v7  ;;  %v507_v5 = vld [vmem:[#allocation7 + $0x4f8] sm:$0xff]  ;;  %v364_v6 = vld [vmem:[#allocation7 + $0x80] sm:$0xff] }
  0xc0   : > { %836 = vmatmul.f32.vlgmr.msra.gmra.mxu0 %v2079_v48  ;;  %859 = vmatmul.f32.vlgmr.msra.gmra.mxu1 %v2082_v49  ;;  %v508_v7 = vld [vmem:[#allocation7 + $0x500] sm:$0xff] }
  0xc1   : > { %912 = vmatpush.msrb.mxu0 %v489_v8  ;;  %935 = vmatpush.msrb.mxu1 %v633_v9  ;;  %v354_v8 = vld [vmem:[#allocation7 + $0x30] sm:$0xff] }
  0xc2   : > { %958 = vmatpush.msrb.mxu2 %v490_v10  ;;  %981 = vmatpush.msrb.mxu3 %v634_v11  ;;  %v498_v9 = vld [vmem:[#allocation7 + $0x4b0] sm:$0xff]  ;;  %v355_v10 = vld [vmem:[#allocation7 + $0x38] sm:$0xff] }
  0xc3   : > { %913 = vmatpush.msrb.mxu0 %v480_v12  ;;  %936 = vmatpush.msrb.mxu1 %v624_v13  ;;  %v499_v11 = vld [vmem:[#allocation7 + $0x4b8] sm:$0xff] }
  0xc4   : > { %959 = vmatpush.msrb.mxu2 %v481_v14  ;;  %982 = vmatpush.msrb.mxu3 %v625_v15  ;;  %v491_v12 = vld [vmem:[#allocation7 + $0x478] sm:$0xff]  ;;  %v482_v14 = vld [vmem:[#allocation7 + $0x430] sm:$0xff] }
  0xc5   : > { %914 = vmatpush.msrb.mxu0 %v471_v16  ;;  %937 = vmatpush.msrb.mxu1 %v615_v17  ;;  %v635_v13 = vld [vmem:[#allocation7 + $0x8f8] sm:$0xff]  ;;  %v626_v15 = vld [vmem:[#allocation7 + $0x8b0] sm:$0xff]  ;;  %v473_v16 = vld [vmem:[#allocation7 + $0x3e8] sm:$0xff] }
  0xc6   : > { %960 = vmatpush.msrb.mxu2 %v472_v18  ;;  %983 = vmatpush.msrb.mxu3 %v616_v19  ;;  %v617_v17 = vld [vmem:[#allocation7 + $0x868] sm:$0xff]  ;;  %v464_v18 = vld [vmem:[#allocation7 + $0x3a0] sm:$0xff] }
  0xc7   : > { %915 = vmatpush.msrb.mxu0 %v462_v20  ;;  %938 = vmatpush.msrb.mxu1 %v606_v21  ;;  %v608_v19 = vld [vmem:[#allocation7 + $0x820] sm:$0xff]  ;;  %v455_v20 = vld [vmem:[#allocation7 + $0x358] sm:$0xff] }
  0xc8   : > { %961 = vmatpush.msrb.mxu2 %v463_v22  ;;  %984 = vmatpush.msrb.mxu3 %v607_v23  ;;  %v599_v21 = vld [vmem:[#allocation7 + $0x7d8] sm:$0xff]  ;;  %v446_v22 = vld [vmem:[#allocation7 + $0x310] sm:$0xff] }
  0xc9   : > { %793 = vmatmul.f32.gmra.mxu2 %v2089_v2  ;;  %816 = vmatmul.f32.gmra.mxu3 %v2092_v3  ;;  %v590_v23 = vld [vmem:[#allocation7 + $0x790] sm:$0xff] }
  0xca   : > { %839 = vmatmul.f32.gmra.mxu0 %v2089_v2  ;;  %862 = vmatmul.f32.gmra.mxu1 %v2092_v3 }
  0xcb   : > { %916 = vmatpush.msrb.mxu0 %v453_v24  ;;  %939 = vmatpush.msrb.mxu1 %v597_v25  ;;  %v437_v24 = vld [vmem:[#allocation7 + $0x2c8] sm:$0xff] }
  0xcc   : > { %962 = vmatpush.msrb.mxu2 %v454_v26  ;;  %985 = vmatpush.msrb.mxu3 %v598_v27  ;;  %v581_v25 = vld [vmem:[#allocation7 + $0x748] sm:$0xff]  ;;  %v428_v26 = vld [vmem:[#allocation7 + $0x280] sm:$0xff] }
  0xcd   : > { %917 = vmatpush.msrb.mxu0 %v444_v28  ;;  %940 = vmatpush.msrb.mxu1 %v588_v29  ;;  %v572_v27 = vld [vmem:[#allocation7 + $0x700] sm:$0xff]  ;;  %v419_v28 = vld [vmem:[#allocation7 + $0x238] sm:$0xff] }
  0xce   : > { %963 = vmatpush.msrb.mxu2 %v445_v30  ;;  %986 = vmatpush.msrb.mxu3 %v589_v31  ;;  %v563_v29 = vld [vmem:[#allocation7 + $0x6b8] sm:$0xff]  ;;  %v410_v30 = vld [vmem:[#allocation7 + $0x1f0] sm:$0xff] }
  0xcf   : > { %918 = vmatpush.msrb.mxu0 %v435_v32  ;;  %941 = vmatpush.msrb.mxu1 %v579_v33  ;;  %v554_v31 = vld [vmem:[#allocation7 + $0x670] sm:$0xff]  ;;  %v401_v32 = vld [vmem:[#allocation7 + $0x1a8] sm:$0xff] }
  0xd0   : > { %964 = vmatpush.msrb.mxu2 %v436_v34  ;;  %987 = vmatpush.msrb.mxu3 %v580_v35  ;;  %v545_v33 = vld [vmem:[#allocation7 + $0x628] sm:$0xff]  ;;  %v392_v34 = vld [vmem:[#allocation7 + $0x160] sm:$0xff] }
  0xd1   : > { %919 = vmatpush.msrb.mxu0 %v426_v36  ;;  %942 = vmatpush.msrb.mxu1 %v570_v37  ;;  %v536_v35 = vld [vmem:[#allocation7 + $0x5e0] sm:$0xff]  ;;  %v383_v36 = vld [vmem:[#allocation7 + $0x118] sm:$0xff] }
  0xd2   : > { %965 = vmatpush.msrb.mxu2 %v427_v38  ;;  %988 = vmatpush.msrb.mxu3 %v571_v39  ;;  %v527_v37 = vld [vmem:[#allocation7 + $0x598] sm:$0xff]  ;;  %v374_v38 = vld [vmem:[#allocation7 + $0xd0] sm:$0xff] }
  0xd3   : > { %882 = vmatmul.f32.vlgmr.msra.gmra.mxu2 %v2079_v48  ;;  %905 = vmatmul.f32.vlgmr.msra.gmra.mxu3 %v2082_v49  ;;  %v518_v39 = vld [vmem:[#allocation7 + $0x550] sm:$0xff] }
  0xd4   : > { %920 = vmatpush.msrb.mxu0 %v417_v40  ;;  %943 = vmatpush.msrb.mxu1 %v561_v41  ;;  %v365_v40 = vld [vmem:[#allocation7 + $0x88] sm:$0xff] }
  0xd5   : > { %966 = vmatpush.msrb.mxu2 %v418_v42  ;;  %989 = vmatpush.msrb.mxu3 %v562_v43  ;;  %v509_v41 = vld [vmem:[#allocation7 + $0x508] sm:$0xff]  ;;  %v356_v42 = vld [vmem:[#allocation7 + $0x40] sm:$0xff] }
  0xd6   : > { %921 = vmatpush.msrb.mxu0 %v408_v44  ;;  %944 = vmatpush.msrb.mxu1 %v552_v45  ;;  %v500_v43 = vld [vmem:[#allocation7 + $0x4c0] sm:$0xff] }
  0xd7   : > { %967 = vmatpush.msrb.mxu2 %v409_v46  ;;  %990 = vmatpush.msrb.mxu3 %v553_v47 }
  0xd8   : > { %922 = vmatpush.msrb.mxu0 %v399_v50  ;;  %945 = vmatpush.msrb.mxu1 %v543_v51 }
  0xd9   : > { %968 = vmatpush.msrb.mxu2 %v400_v52  ;;  %991 = vmatpush.msrb.mxu3 %v544_v53 }
  0xda   : > { %923 = vmatpush.msrb.mxu0 %v390_v54  ;;  %946 = vmatpush.msrb.mxu1 %v534_v55 }
  0xdb   : > { %969 = vmatpush.msrb.mxu2 %v391_v56  ;;  %992 = vmatpush.msrb.mxu3 %v535_v57 }
  0xdc   : > { %885 = vmatmul.f32.gmra.mxu2 %v2089_v2  ;;  %908 = vmatmul.f32.gmra.mxu3 %v2092_v3 }
  0xdd   : > { %924 = vmatpush.msrb.mxu0 %v381_v58  ;;  %947 = vmatpush.msrb.mxu1 %v525_v59 }
  0xde   : > { %970 = vmatpush.msrb.mxu2 %v382_v60  ;;  %993 = vmatpush.msrb.mxu3 %v526_v61  ;;  %v2135_v61 = vld [vmem:[#allocation10] sm:$0x7] }
  0xdf   : > { %925 = vmatpush.msrb.mxu0 %v372_v62  ;;  %948 = vmatpush.msrb.mxu1 %v516_v63  ;;  %v342_v62 = vperm.slane %v2135_v61, 0 }
  0xe0   : > { %971 = vmatpush.msrb.mxu2 %v373_v0  ;;  %994 = vmatpush.msrb.mxu3 %v517_v1 }
  0xe1   : > { %926 = vmatpush.msrb.mxu0 %v363_v4  ;;  %949 = vmatpush.msrb.mxu1 %v507_v5 }
  0xe2   : > { %972 = vmatpush.msrb.mxu2 %v364_v6  ;;  %995 = vmatpush.msrb.mxu3 %v508_v7 }
  0xe3   : > { %927 = vmatpush.msrb.mxu0 %v354_v8  ;;  %950 = vmatpush.msrb.mxu1 %v498_v9 }
  0xe4   : > { %973 = vmatpush.msrb.mxu2 %v355_v10  ;;  %996 = vmatpush.msrb.mxu3 %v499_v11 }
  0xe5   : > { %928 = vmatmul.f32.vlgmr.msrb.gmra.mxu0 %v2079_v48  ;;  %951 = vmatmul.f32.vlgmr.msrb.gmra.mxu1 %v2082_v49 }
  0xe6   : > { %974 = vmatmul.f32.vlgmr.msrb.gmra.mxu2 %v2079_v48  ;;  %997 = vmatmul.f32.vlgmr.msrb.gmra.mxu3 %v2082_v49 }
  0xe7   : > { %1004 = vmatpush.msra.mxu0 %v491_v12  ;;  %1027 = vmatpush.msra.mxu1 %v635_v13 }
  0xe9   : > { %1005 = vmatpush.msra.mxu0 %v482_v14  ;;  %1028 = vmatpush.msra.mxu1 %v626_v15 }
  0xeb   : > { %1006 = vmatpush.msra.mxu0 %v473_v16  ;;  %1029 = vmatpush.msra.mxu1 %v617_v17  ;;  %v344_v17 = vperm.slane %v2135_v61, 2 }
  0xed   : > { %1007 = vmatpush.msra.mxu0 %v464_v18  ;;  %1030 = vmatpush.msra.mxu1 %v608_v19 }
  0xee   : > { %931 = vmatmul.f32.gmra.mxu0 %v2089_v2  ;;  %954 = vmatmul.f32.gmra.mxu1 %v2092_v3 }
  0xef   : > { %977 = vmatmul.f32.gmra.mxu2 %v2089_v2  ;;  %1000 = vmatmul.f32.gmra.mxu3 %v2092_v3 }
  0xf0   : > { %1008 = vmatpush.msra.mxu0 %v455_v20  ;;  %1031 = vmatpush.msra.mxu1 %v599_v21 }
  0xf2   : > { %1009 = vmatpush.msra.mxu0 %v446_v22  ;;  %1032 = vmatpush.msra.mxu1 %v590_v23 }
  0xf4   : > { %1010 = vmatpush.msra.mxu0 %v437_v24  ;;  %1033 = vmatpush.msra.mxu1 %v581_v25  ;;  %v1241_v25 = vld [vmem:[#allocation8 + $0x168] sm:$0xff] }
  0xf5   : > { %1244 = vmatpush.msra.mxu2 %v1241_v25  ;;  %v1209_v25 = vld [vmem:[#allocation8 + $0x68] sm:$0xff] }
  0xf6   : > { %1011 = vmatpush.msra.mxu0 %v428_v26  ;;  %1034 = vmatpush.msra.mxu1 %v572_v27  ;;  %v1242_v26 = vld [vmem:[#allocation8 + $0x170] sm:$0xff]  ;;  %v1243_v27 = vld [vmem:[#allocation8 + $0x178] sm:$0xff] }
  0xf7   : > { %1267 = vmatpush.msra.mxu3 %v1242_v26  ;;  %v1210_v26 = vld [vmem:[#allocation8 + $0x70] sm:$0xff] }
  0xf8   : > { %1012 = vmatpush.msra.mxu0 %v419_v28  ;;  %1035 = vmatpush.msra.mxu1 %v563_v29  ;;  %v1238_v29 = vld [vmem:[#allocation8 + $0x150] sm:$0xff] }
  0xf9   : > { %1245 = vmatpush.msra.mxu2 %v1238_v29 }
  0xfa   : > { %1013 = vmatpush.msra.mxu0 %v410_v30  ;;  %1036 = vmatpush.msra.mxu1 %v554_v31  ;;  %v1239_v30 = vld [vmem:[#allocation8 + $0x158] sm:$0xff]  ;;  %v1240_v31 = vld [vmem:[#allocation8 + $0x160] sm:$0xff] }
  0xfb   : > { %1268 = vmatpush.msra.mxu3 %v1239_v30 }
  0xfc   : > { %1014 = vmatpush.msra.mxu0 %v401_v32  ;;  %1037 = vmatpush.msra.mxu1 %v545_v33 }
  0xfe   : > { %1015 = vmatpush.msra.mxu0 %v392_v34  ;;  %1038 = vmatpush.msra.mxu1 %v536_v35  ;;  %v1235_v34 = vld [vmem:[#allocation8 + $0x138] sm:$0xff]  ;;  %v1236_v35 = vld [vmem:[#allocation8 + $0x140] sm:$0xff] }
  0xff   : > { %1246 = vmatpush.msra.mxu2 %v1235_v34  ;;  %1269 = vmatpush.msra.mxu3 %v1236_v35  ;;  %v1207_v34 = vld [vmem:[#allocation8 + $0x58] sm:$0xff] }
 0x100   : > { %1016 = vmatpush.msra.mxu0 %v383_v36  ;;  %1039 = vmatpush.msra.mxu1 %v527_v37  ;;  %v1237_v36 = vld [vmem:[#allocation8 + $0x148] sm:$0xff] }
 0x102   : > { %1017 = vmatpush.msra.mxu0 %v374_v38  ;;  %1040 = vmatpush.msra.mxu1 %v518_v39  ;;  %v1232_v38 = vld [vmem:[#allocation8 + $0x120] sm:$0xff]  ;;  %v1233_v39 = vld [vmem:[#allocation8 + $0x128] sm:$0xff] }
 0x103   : > { %1247 = vmatpush.msra.mxu2 %v1232_v38  ;;  %1270 = vmatpush.msra.mxu3 %v1233_v39 }
 0x104   : > { %1018 = vmatpush.msra.mxu0 %v365_v40  ;;  %1041 = vmatpush.msra.mxu1 %v509_v41  ;;  %v1234_v40 = vld [vmem:[#allocation8 + $0x130] sm:$0xff] }
 0x106   : > { %1019 = vmatpush.msra.mxu0 %v356_v42  ;;  %1042 = vmatpush.msra.mxu1 %v500_v43 }
 0x107   : > { %1020 = vmatmul.f32.vlgmr.msra.gmra.mxu0 %v2079_v48  ;;  %1043 = vmatmul.f32.vlgmr.msra.gmra.mxu1 %v2082_v49 }
 0x108   : > { %1290 = vmatpush.msrb.mxu0 %v1243_v27  ;;  %1514 = vmatpush.msrb.mxu1 %v1243_v27 }
 0x10a   : > { %1291 = vmatpush.msrb.mxu0 %v1240_v31  ;;  %1515 = vmatpush.msrb.mxu1 %v1240_v31 }
 0x10c   : > { %1292 = vmatpush.msrb.mxu0 %v1237_v36  ;;  %1516 = vmatpush.msrb.mxu1 %v1237_v36 }
 0x10e   : > { %1293 = vmatpush.msrb.mxu0 %v1234_v40  ;;  %1517 = vmatpush.msrb.mxu1 %v1234_v40  ;;  %v1204_v40 = vld [vmem:[#allocation8 + $0x40] sm:$0xff] }
 0x10f   : > { %1023 = vmatmul.f32.gmra.mxu0 %v2089_v2  ;;  %1046 = vmatmul.f32.gmra.mxu1 %v2092_v3 }
 0x114   : > { %v2127_v57 = vpop.f32.mrf.mxu2  ;;  %v2129_v49 = vpop.f32.mrf.mxu3 }
 0x115   : > { %v653_v44 = vpop.f32.mrf.mxu0  ;;  %v676_v45 = vpop.f32.mrf.mxu1 }
 0x116   : > { %v677_v46 = vadd.f32 %v676_v45, %v653_v44  ;;  %v1229_v44 = vld [vmem:[#allocation8 + $0x108] sm:$0xff]  ;;  %v1230_v45 = vld [vmem:[#allocation8 + $0x110] sm:$0xff] }
 0x117   : > { %1248 = vmatpush.msra.mxu2 %v1229_v44  ;;  %1271 = vmatpush.msra.mxu3 %v1230_v45 }
 0x118   : > { %v1057_v55 = vrot.slane %v677_v46, 7  ;;  %v1231_v46 = vld [vmem:[#allocation8 + $0x118] sm:$0xff] }
 0x119   : > { %1294 = vmatpush.msrb.mxu0 %v1231_v46  ;;  %1518 = vmatpush.msrb.mxu1 %v1231_v46  ;;  %v1200_v46 = vld [vmem:[#allocation8 + $0x20] sm:$0xff] }
 0x11a   : > { %v1072_v4 = vsel %vm1056_vm0, 0.0, %v1057_v55 }
 0x11e   : > { %v2131_v59 = vpop.f32.mrf.mxu2  ;;  %v2133_v60 = vpop.f32.mrf.mxu3 }
 0x121   : > { %v656_v47 = vpop.f32.mrf.mxu0  ;;  %v679_v50 = vpop.f32.mrf.mxu1 }
 0x122   : > { %v680_v51 = vadd.f32 %v679_v50, %v656_v47  ;;  %v1226_v50 = vld [vmem:[#allocation8 + $0xf0] sm:$0xff] }
 0x123   : > { %1249 = vmatpush.msra.mxu2 %v1226_v50 }
 0x124   : > { %v1060_v52 = vrot.slane %v680_v51, 7  ;;  %v1227_v51 = vld [vmem:[#allocation8 + $0xf8] sm:$0xff] }
 0x125   : > { %1272 = vmatpush.msra.mxu3 %v1227_v51 }
 0x126   : > { %v1061_v48 = vsel %vm1056_vm0, %v1057_v55, %v1060_v52  ;;  %v1228_v52 = vld [vmem:[#allocation8 + $0x100] sm:$0xff]  ;;  %v1225_v55 = vld [vmem:[#allocation8 + $0xe8] sm:$0xff] }
 0x127   : > { %1295 = vmatpush.msrb.mxu0 %v1228_v52  ;;  %1519 = vmatpush.msrb.mxu1 %v1228_v52  ;;  %v1201_v52 = vld [vmem:[#allocation8 + $0x28] sm:$0xff] }
 0x129   : > { %1296 = vmatpush.msrb.mxu0 %v1225_v55  ;;  %1520 = vmatpush.msrb.mxu1 %v1225_v55  ;;  %v1196_v55 = vld [vmem:[#allocation8] sm:$0xff] }
 0x12a   : > { %v745_v53 = vpop.f32.mrf.mxu0  ;;  %v768_v54 = vpop.f32.mrf.mxu1 }
 0x12b   : > { %v769_v56 = vadd.f32 %v768_v54, %v745_v53  ;;  %v1223_v53 = vld [vmem:[#allocation8 + $0xd8] sm:$0xff]  ;;  %v1224_v54 = vld [vmem:[#allocation8 + $0xe0] sm:$0xff] }
 0x12c   : > { %1250 = vmatpush.msra.mxu2 %v1223_v53  ;;  %1273 = vmatpush.msra.mxu3 %v1224_v54 }
 0x12d   : > { %v1059_v8 = vrot.slane %v769_v56, 7 }
 0x12f   : > { %v1074_v21 = vsel %vm1056_vm0, 0.0, %v1059_v8 }
 0x133   : > { %v748_v2 = vpop.f32.mrf.mxu0  ;;  %v771_v3 = vpop.f32.mrf.mxu1 }
 0x134   : > { %v772_v58 = vadd.f32 %v771_v3, %v748_v2  ;;  %v1220_v3 = vld [vmem:[#allocation8 + $0xc0] sm:$0xff] }
 0x135   : > { %1251 = vmatpush.msra.mxu2 %v1220_v3  ;;  %v1198_v3 = vld [vmem:[#allocation8 + $0x10] sm:$0xff] }
 0x136   : > { %v1064_v6 = vrot.slane %v772_v58, 7  ;;  %v1221_v58 = vld [vmem:[#allocation8 + $0xc8] sm:$0xff] }
 0x137   : > { %1274 = vmatpush.msra.mxu3 %v1221_v58 }
 0x138   : > { %v1065_v9 = vsel %vm1056_vm0, %v1059_v8, %v1064_v6  ;;  %v723_v6 = vadd.f32 %v2129_v49, %v2127_v57 }
 0x13d   : > { %v2142_v14 = vpop.f32.mrf.mxu0  ;;  %v2144_v15 = vpop.f32.mrf.mxu1 }
 0x140   : > { %v791_v63 = vpop.f32.mrf.mxu2  ;;  %v814_v0 = vpop.f32.mrf.mxu3 }
 0x141   : > { %v815_v1 = vadd.f32 %v814_v0, %v791_v63 }
 0x143   : > { %v1100_v5 = vadd.f32 %v815_v1, %v342_v62  ;;  %v1217_v1 = vld [vmem:[#allocation8 + $0xa8] sm:$0xff] }
 0x144   : > { %1252 = vmatpush.msra.mxu2 %v1217_v1 }
 0x145   : > { %v2139_v7 = vadd.f32 %v1100_v5, %v1072_v4  ;;  %v1218_v4 = vld [vmem:[#allocation8 + $0xb0] sm:$0xff]  ;;  %v1219_v5 = vld [vmem:[#allocation8 + $0xb8] sm:$0xff] }
 0x146   : > { %1275 = vmatpush.msra.mxu3 %v1218_v4 }
 0x147   : > { %v2150_v23 = vpop.f32.mrf.mxu0  ;;  %v2152_v24 = vpop.f32.mrf.mxu1 }
 0x148   : > { %v864_v57 = vadd.f32 %v2152_v24, %v2150_v23  ;;  %v1208_v24 = vld [vmem:[#allocation8 + $0x60] sm:$0xff] }
 0x14c   : > { %v794_v10 = vpop.f32.mrf.mxu2  ;;  %v817_v11 = vpop.f32.mrf.mxu3 }
 0x14d   : > { %v818_v12 = vadd.f32 %v817_v11, %v794_v10  ;;  %v726_v10 = vadd.f32 %v2133_v60, %v2131_v59  ;;  %v1214_v11 = vld [vmem:[#allocation8 + $0x90] sm:$0xff]  ;;  %v1211_v59 = vld [vmem:[#allocation8 + $0x78] sm:$0xff]  ;;  %v1212_v60 = vld [vmem:[#allocation8 + $0x80] sm:$0xff] }
 0x14e   : > { %1253 = vmatpush.msra.mxu2 %v1214_v11 }
 0x14f   : > { %v1103_v13 = vadd.f32 %v818_v12, %v342_v62  ;;  %v1222_v62 = vld [vmem:[#allocation8 + $0xd0] sm:$0xff]  ;;  %v1215_v12 = vld [vmem:[#allocation8 + $0x98] sm:$0xff] }
 0x150   : > { %1297 = vmatpush.msrb.mxu0 %v1222_v62  ;;  %1521 = vmatpush.msrb.mxu1 %v1222_v62 }
 0x151   : > { %v2146_v16 = vadd.f32 %v1103_v13, %v1061_v48  ;;  %v1216_v13 = vld [vmem:[#allocation8 + $0xa0] sm:$0xff]  ;;  %1276 = vmatpush.msra.mxu3 %v1215_v12  ;;  %1254 = vmatpush.msra.mxu2 %v1211_v59 }
 0x152   : > { %1298 = vmatpush.msrb.mxu0 %v1219_v5  ;;  %1522 = vmatpush.msrb.mxu1 %v1219_v5 }
 0x153   : > { %1277 = vmatpush.msra.mxu3 %v1212_v60  ;;  %1255 = vmatpush.msra.mxu2 %v1208_v24 }
 0x154   : > { %1299 = vmatpush.msrb.mxu0 %v1216_v13  ;;  %1523 = vmatpush.msrb.mxu1 %v1216_v13 }
 0x155   : > { %1278 = vmatpush.msra.mxu3 %v1209_v25 }
 0x156   : > { %v883_v18 = vpop.f32.mrf.mxu2  ;;  %v906_v19 = vpop.f32.mrf.mxu3 }
 0x157   : > { %v907_v20 = vadd.f32 %v906_v19, %v883_v18  ;;  %v861_v18 = vadd.f32 %v2144_v15, %v2142_v14  ;;  %v1213_v19 = vld [vmem:[#allocation8 + $0x88] sm:$0xff]  ;;  %v1062_v14 = vrot.slane %v726_v10, 7 }
 0x158   : > { %1300 = vmatpush.msrb.mxu0 %v1213_v19  ;;  %1524 = vmatpush.msrb.mxu1 %v1213_v19 }
 0x159   : > { %v1102_v22 = vadd.f32 %v907_v20, %v344_v17  ;;  %v1058_v20 = vrot.slane %v723_v6, 7 }
 0x15a   : > { %1301 = vmatpush.msrb.mxu0 %v1210_v26  ;;  %1525 = vmatpush.msrb.mxu1 %v1210_v26 }
 0x15b   : > { %v2154_v28 = vadd.f32 %v1102_v22, %v1074_v21  ;;  %v1073_v38 = vsel %vm1056_vm0, 0.0, %v1058_v20 }
 0x15c   : > { %1302 = vmatpush.msrb.mxu0 %v1207_v34  ;;  %1526 = vmatpush.msrb.mxu1 %v1207_v34 }
 0x15e   : > { %1303 = vmatpush.msrb.mxu0 %v1204_v40  ;;  %1527 = vmatpush.msrb.mxu1 %v1204_v40 }
 0x15f   : > { %v886_v32 = vpop.f32.mrf.mxu2  ;;  %v909_v33 = vpop.f32.mrf.mxu3 }
 0x160   : > { %v910_v37 = vadd.f32 %v909_v33, %v886_v32  ;;  %v1205_v32 = vld [vmem:[#allocation8 + $0x48] sm:$0xff]  ;;  %v1206_v33 = vld [vmem:[#allocation8 + $0x50] sm:$0xff]  ;;  %1304 = vmatpush.msrb.mxu0 %v1201_v52  ;;  %1528 = vmatpush.msrb.mxu1 %v1201_v52 }
 0x161   : > { %1256 = vmatpush.msra.mxu2 %v1205_v32  ;;  %1279 = vmatpush.msra.mxu3 %v1206_v33 }
 0x162   : > { %v1105_v41 = vadd.f32 %v910_v37, %v344_v17  ;;  %v929_v42 = vpop.f32.mrf.mxu0  ;;  %v952_v43 = vpop.f32.mrf.mxu1  ;;  %v343_v17 = vperm.slane %v2135_v61, 1  ;;  %1305 = vmatpush.msrb.mxu0 %v1198_v3  ;;  %1529 = vmatpush.msrb.mxu1 %v1198_v3 }
 0x163   : > { %v953_v56 = vadd.f32 %v952_v43, %v929_v42  ;;  %v1063_v42 = vsel %vm1056_vm0, %v1058_v20, %v1062_v14 }
 0x164   : > { %v2156_v47 = vadd.f32 %v1105_v41, %v1065_v9  ;;  %v1101_v27 = vadd.f32 %v861_v18, %v343_v17  ;;  %v1104_v29 = vadd.f32 %v864_v57, %v343_v17  ;;  %v1199_v41 = vld [vmem:[#allocation8 + $0x18] sm:$0xff] }
 0x165   : > { %v1082_v8 = vrot.slane %v953_v56, 1  ;;  %v1197_v56 = vld [vmem:[#allocation8 + $0x8] sm:$0xff] }
 0x166   : > { %v1107_v50 = vadd.f32 %v1101_v27, %v1073_v38  ;;  %v1110_v51 = vadd.f32 %v1104_v29, %v1063_v42 }
 0x169   : > { %v975_v48 = vpop.f32.mrf.mxu2  ;;  %v998_v2 = vpop.f32.mrf.mxu3 }
 0x16a   : > { %v999_v21 = vadd.f32 %v998_v2, %v975_v48 }
 0x16b   : > { %v932_v63 = vpop.f32.mrf.mxu0  ;;  %v955_v0 = vpop.f32.mrf.mxu1 }
 0x16c   : > { %v956_v9 = vadd.f32 %v955_v0, %v932_v63  ;;  %v1085_v39 = vrot.slane %v999_v21, 1 }
 0x16e   : > { %v1083_v49 = vrot.slane %v956_v9, 1 }
 0x170   : > { %v1084_v22 = vsel %vm1081_vm1, %v1082_v8, %v1083_v49  ;;  %v1097_v61 = vsel %vm1081_vm1, %v1083_v49, 0.0 }
 0x171   : > { %v1112_v15 = vadd.f32 %v2139_v7, %v1084_v22  ;;  %v1115_v23 = vadd.f32 %v2146_v16, %v1097_v61  ;;  %v1202_v7 = vld [vmem:[#allocation8 + $0x30] sm:$0xff]  ;;  %v1203_v16 = vld [vmem:[#allocation8 + $0x38] sm:$0xff] }
 0x172   : > { %v978_v30 = vpop.f32.mrf.mxu2  ;;  %v1001_v31 = vpop.f32.mrf.mxu3  ;;  %1257 = vmatpush.msra.mxu2 %v1202_v7  ;;  %1280 = vmatpush.msra.mxu3 %v1203_v16 }
 0x173   : > { %v1118_v35 = vsub.f32 0.0, %v1112_v15  ;;  %v1119_v36 = vsub.f32 0.0, %v1115_v23  ;;  %v1002_v37 = vadd.f32 %v1001_v31, %v978_v30  ;;  %v338_v30 = vld [vmem:[%s2064_s12] sm:$0xff] }
 0x174   : > { %1258 = vmatpush.msra.mxu2 %v1199_v41  ;;  %1281 = vmatpush.msra.mxu3 %v1200_v46 }
 0x175   : > { %v1120_v43 = vmul.f32 1.442695, %v1118_v35  ;;  %v1122_v44 = vmul.f32 1.442695, %v1119_v36  ;;  %v1086_v45 = vrot.slane %v1002_v37, 1  ;;  %v339_v37 = vld [vmem:[%s2064_s12 + $0x8] sm:$0xff] }
 0x176   : > { %1259 = vmatpush.msra.mxu2 %v1196_v55  ;;  %1282 = vmatpush.msra.mxu3 %v1197_v56 }
 0x177   : > { %1622 = vpow2.f32 %v1120_v43  ;;  %v1087_v53 = vsel %vm1081_vm1, %v1085_v39, %v1086_v45  ;;  %v1098_v54 = vsel %vm1081_vm1, %v1086_v45, 0.0 }
 0x178   : > { %1624 = vpow2.f32 %v1122_v44  ;;  %v1113_v48 = vadd.f32 %v1107_v50, %v1087_v53  ;;  %v1116_v2 = vadd.f32 %v1110_v51, %v1098_v54 }
 0x17a   : > { %v1156_v58 = vsub.f32 0.0, %v1113_v48  ;;  %v1157_v62 = vsub.f32 0.0, %v1116_v2 }
 0x17c   : > { %v1158_v63 = vmul.f32 1.442695, %v1156_v58  ;;  %v1160_v0 = vmul.f32 1.442695, %v1157_v62 }
 0x17d   : > { %v1623_v1 = vpop.eup %1622 }
 0x17e   : > { %v1625_v4 = vpop.eup %1624  ;;  %v1124_v5 = vadd.f32 1.0, %v1623_v1  ;;  %1626 = vpow2.f32 %v1158_v63 }
 0x17f   : > { %v1125_v6 = vadd.f32 1.0, %v1625_v4  ;;  %1628 = vpow2.f32 %v1160_v0 }
 0x180   : > { %1630 = vrcp.f32 %v1124_v5  ;;  %v1135_v59 = vand.u32 2147483647, %v1124_v5  ;;  %v1137_v60 = vand.u32 2147483648, %v1124_v5  ;;  %vm1131_vm4 = vweird.f32 %v1124_v5 }
 0x181   : > { %1632 = vrcp.f32 %v1125_v6  ;;  %v1150_v20 = vand.u32 2147483647, %v1125_v6  ;;  %v1152_v21 = vand.u32 2147483648, %v1125_v6  ;;  %vm1146_vm5 = vweird.f32 %v1125_v6 }
 0x182   : > { %vm1136_vm7 = vcmp.eq.f32.partialorder %v1135_v59, 8.507059e+37  ;;  %v1138_v23 = vor.u32 1.1754944e-38, %v1137_v60 }
 0x183   : > { %vm1151_vm9 = vcmp.eq.f32.partialorder %v1150_v20, 8.507059e+37  ;;  %v1153_v27 = vor.u32 1.1754944e-38, %v1152_v21 }
 0x184   : > { %v1627_v8 = vpop.eup %1626  ;;  %v1021_v2 = vpop.f32.mrf.mxu0 }
 0x185   : > { %v1629_v9 = vpop.eup %1628  ;;  %v1162_v10 = vadd.f32 1.0, %v1627_v8  ;;  %v1044_v3 = vpop.f32.mrf.mxu1 }
 0x186   : > { %v1631_v11 = vpop.eup %1630  ;;  %v2175_v12 = vadd.f32 1.0, %v1629_v9  ;;  %v1045_v63 = vadd.f32 %v1044_v3, %v1021_v2 }
 0x187   : > { %v1633_v13 = vpop.eup %1632  ;;  %v1127_v17 = vmul.f32 %v1631_v11, %v1124_v5  ;;  %1634 = vrcp.f32 %v1162_v10  ;;  %vm1132_vm2 = vweird.f32 %v1631_v11  ;;  %v1173_v33 = vand.u32 2147483647, %v1162_v10 }
 0x188   : > { %v1142_v18 = vmul.f32 %v1633_v13, %v1125_v6  ;;  %1636 = vrcp.f32 %v2175_v12  ;;  %vm1147_vm3 = vweird.f32 %v1633_v13  ;;  %vm1133_vm6 = vmor %vm1131_vm4, %vm1132_vm2  ;;  %v1175_v35 = vand.u32 2147483648, %v1162_v10 }
 0x189   : > { %v1128_v57 = vsub.f32 1.0, %v1127_v17  ;;  %vm1148_vm8 = vmor %vm1146_vm5, %vm1147_vm3  ;;  %v1190_v39 = vand.u32 2147483648, %v2175_v12  ;;  %v1188_v43 = vand.u32 2147483647, %v2175_v12  ;;  %vm1169_vm12 = vweird.f32 %v1162_v10 }
 0x18a   : > { %v1143_v49 = vsub.f32 1.0, %v1142_v18  ;;  %v1176_v46 = vor.u32 1.1754944e-38, %v1175_v35  ;;  %vm1184_vm14 = vweird.f32 %v2175_v12  ;;  %vm1174_vm15 = vcmp.eq.f32.partialorder %v1173_v33, 8.507059e+37 }
 0x18b   : > { %v1129_v19 = vmul.f32 %v1631_v11, %v1128_v57  ;;  %v1191_v52 = vor.u32 1.1754944e-38, %v1190_v39  ;;  %vm1189_vm3 = vcmp.eq.f32.partialorder %v1188_v43, 8.507059e+37  ;;  %v1088_v1 = vrot.slane %v1045_v63, 1 }
 0x18c   : > { %v1144_v22 = vmul.f32 %v1633_v13, %v1143_v49  ;;  %v1024_v58 = vpop.f32.mrf.mxu0 }
 0x18d   : > { %v1635_v61 = vpop.eup %1634  ;;  %v1130_v14 = vadd.f32 %v1631_v11, %v1129_v19  ;;  %v1047_v62 = vpop.f32.mrf.mxu1 }
 0x18e   : > { %v1637_v15 = vpop.eup %1636  ;;  %v1165_v24 = vmul.f32 %v1635_v61, %v1162_v10  ;;  %v1145_v25 = vadd.f32 %v1633_v13, %v1144_v22  ;;  %vm1170_vm10 = vweird.f32 %v1635_v61  ;;  %v1048_v0 = vadd.f32 %v1047_v62, %v1024_v58 }
 0x18f   : > { %v1134_v26 = vsel %vm1133_vm6, %v1631_v11, %v1130_v14  ;;  %v1180_v29 = vmul.f32 %v1637_v15, %v2175_v12  ;;  %vm1185_vm11 = vweird.f32 %v1637_v15  ;;  %vm1171_vm13 = vmor %vm1169_vm12, %vm1170_vm10 }
 0x190   : > { %v2180_v31 = vsel %vm1136_vm7, %v1138_v23, %v1134_v26  ;;  %v1166_v32 = vsub.f32 1.0, %v1165_v24  ;;  %v1149_v34 = vsel %vm1148_vm8, %v1633_v13, %v1145_v25  ;;  %vm1186_vm2 = vmor %vm1184_vm14, %vm1185_vm11  ;;  %v1089_v4 = vrot.slane %v1048_v0, 1 }
 0x191   : > { %v1337_v36 = vsub.f32 1.0, %v2180_v31  ;;  %v2184_v7 = vsel %vm1151_vm9, %v1153_v27, %v1149_v34  ;;  %v1181_v16 = vsub.f32 1.0, %v1180_v29 }
 0x192   : > { %v1167_v38 = vmul.f32 %v1635_v61, %v1166_v32  ;;  %v1338_v40 = vsub.f32 1.0, %v2184_v7  ;;  %v1090_v5 = vsel %vm1081_vm1, %v1088_v1, %v1089_v4  ;;  %v1099_v49 = vsel %vm1081_vm1, %v1089_v4, 0.0 }
 0x193   : > { %v2188_v41 = vmul.f32 %v1337_v36, %v338_v30  ;;  %v1182_v42 = vmul.f32 %v1637_v15, %v1181_v16  ;;  %v1114_v9 = vadd.f32 %v2154_v28, %v1090_v5  ;;  %v1117_v20 = vadd.f32 %v2156_v47, %v1099_v49 }
 0x194   : > { %v1168_v44 = vadd.f32 %v1635_v61, %v1167_v38  ;;  %v2191_v45 = vmul.f32 %v1338_v40, %v339_v37 }
 0x195   : > { %v1183_v50 = vadd.f32 %v1637_v15, %v1182_v42 }
 0x196   : > { %v1172_v51 = vsel %vm1171_vm13, %v1635_v61, %v1168_v44 }
 0x197   : > { %v1177_v53 = vsel %vm1174_vm15, %v1176_v46, %v1172_v51  ;;  %v1187_v54 = vsel %vm1186_vm2, %v1637_v15, %v1183_v50 }
 0x198   : > { %v1194_v55 = vmul.f32 %v1177_v53, %v338_v30  ;;  %v1192_v56 = vsel %vm1189_vm3, %v1191_v52, %v1187_v54 }
 0x199   : > { %v1195_v48 = vmul.f32 %v1192_v56, %v339_v37 }
 0x19a   : > { %1260 = vmatmul.f32.vlgmr.msra.gmra.mxu2 %v1194_v55  ;;  %1283 = vmatmul.f32.vlgmr.msra.gmra.mxu3 %v1194_v55 }
 0x19b   : > { %1306 = vmatmul.f32.vlgmr.msrb.gmra.mxu0 %v1194_v55  ;;  %1309 = vmatmul.f32.vlgmr.msrb.gmra.mxu1 %v1195_v48 }
 0x1a2   : > { %1263 = vmatmul.f32.gmra.mxu2 %v1195_v48  ;;  %1286 = vmatmul.f32.gmra.mxu3 %v1195_v48 }
 0x218   : > { %v1307_v6 = vpop.f32.mrf.mxu0  ;;  %v1310_v8 = vpop.f32.mrf.mxu1 }
 0x219   : > { %v1323_v12 = vrot.slane %v1307_v6, 1  ;;  %v1324_v13 = vrot.slane %v1310_v8, 1 }
 0x21b   : > { %v1325_v60 = vsel %vm1081_vm1, %v1323_v12, %v1324_v13  ;;  %v1328_v23 = vsel %vm1081_vm1, %v1324_v13, 0.0 }
 0x21d   : > { %v1261_v10 = vpop.f32.mrf.mxu2  ;;  %v1284_v11 = vpop.f32.mrf.mxu3 }
 0x21e   : > { %v1315_v17 = vrot.slane %v1261_v10, 7  ;;  %v1329_v18 = vadd.f32 %v1284_v11, %v1114_v9 }
 0x220   : > { %v1320_v57 = vsel %vm1056_vm0, 0.0, %v1315_v17 }
 0x221   : > { %v1331_v59 = vadd.f32 %v1329_v18, %v1320_v57 }
 0x223   : > { %v1333_v19 = vadd.f32 %v1331_v59, %v1325_v60 }
 0x225   : > { %1638 = vtanh.f32 %v1333_v19  ;;  %v1264_v28 = vpop.f32.mrf.mxu2  ;;  %v1287_v21 = vpop.f32.mrf.mxu3 }
 0x226   : > { %v1316_v22 = vrot.slane %v1264_v28, 7  ;;  %v1330_v61 = vadd.f32 %v1287_v21, %v1117_v20 }
 0x228   : > { %v1317_v14 = vsel %vm1056_vm0, %v1315_v17, %v1316_v22 }
 0x229   : > { %v1332_v15 = vadd.f32 %v1330_v61, %v1317_v14 }
 0x22b   : > { %v1639_v24 = vpop.eup %1638  ;;  %v1334_v25 = vadd.f32 %v1332_v15, %v1328_v23 }
 0x22c   : > { %v1341_v26 = vmul.f32 %v1639_v24, %v2180_v31 }
 0x22d   : > { %1640 = vtanh.f32 %v1334_v25 }
 0x22e   : > { %v1343_v47 = vadd.f32 %v1341_v26, %v2188_v41 }
 0x230   : > { %1345 = vst [vmem:[%s333_s13] sm:$0xff] %v1343_v47 }
 0x233   : > { %v1641_v27 = vpop.eup %1640 }
 0x234   : > { %v1342_v29 = vmul.f32 %v1641_v27, %v2184_v7 }
 0x236   : > { %v1344_v30 = vadd.f32 %v1342_v29, %v2191_v45 }
 0x238   : > { %1346 = vst [vmem:[%s333_s13 + $0x8] sm:$0xff] %v1344_v30 }
 0x239   : > { %1819 = shalt.err (!%p1816_p9)
}
 0x23a   : > { %s1883_s27 = smov 128   ;;  %s1884_s17 = smov 8  }
 0x23b   : > { %1546 = dma.vmem_to_hbm [thread:$0]  (%p1998_p7), %s1361_s15, 256, %s1363_s2, %s1348_s22, %s1883_s27, %s1883_s27, %s1884_s17  }
 0x23c PF: > { %s1377_s0 = sand.u32 1, %s1858_s18   ;;  %p2262_p12 = scmp.ge.s32.totalorder %s1870_s21, 2 }
 0x23d   : > { %s1378_s29 = scalar_lea.sflag [#allocation4], %s1377_s0 }
 0x23e   : > { %p1566_p13 = pnand %p2262_p12, %p1950_p6 }
 0x240   : > { %p1567_p0 = pneg %p1566_p13 }
 0x242   : > { %1853 = dma.done.wait (%p1567_p0), %s1378_s29, 256  }
 0x243   : > { %1855 = vsyncadd (%p1567_p0), %s1378_s29, 4294967040  ;;  %s2263_s26 = sld [smem:[#allocation17_spill]]  ;;  %p22_p3 = scmp.ge.s32.totalorder %s1984_s30, 4  }
 0x244   : > { %s2264_s18 = smov %s1862_s19  ;;  %s2265_s19 = smov %s1866_s20 }
 0x245   : > { %s2267_s21 = smov %s1984_s30  ;;  %24 = sbr.rel (!%p22_p3) target bundleno = 13 (0xd), region = 110 }
 0x249   : > { %s2266_s20 = smov %s2263_s26 }
 0x24a   :  { %1384 = vsyncpa [#allocation3], 1 }
 0x24b   :  { %1386 = vsyncpa [#allocation3 + $0x1], 1 }
 0x24c   :  { %1387 = vsyncpa [#allocation6], 1 }
 0x24d   :  { %1389 = vsyncpa [#allocation6 + $0x1], 1 }
 0x24e   :  { %1390 = vsyncpa [#allocation9], 1 }
 0x24f   :  { %1391 = vsyncpa [#allocation4], 1 }
 0x250   :  { %1393 = vsyncpa [#allocation4 + $0x1], 1 }

</bundles_post_ra>
